<compile_context>
chip_gen: v7x
topology: tpu7x:2x2x1
jax: 0.10.0
libtpu: 0.0.40
codegen_flags: <defaults>
</compile_context>

<pallas_src>
import functools

import jax
import jax.numpy as jnp
from jax.experimental import pallas as pl
from jax.experimental.pallas import tpu as pltpu


# ------------------------------------------------------------------ helpers --
def _shift_w(x, d, W):
    """out[:, w, :] = x[:, w + d, :], zero outside the image (|d| <= 1)."""
    if d == 0:
        return x
    # pltpu.roll follows np.roll semantics: out[i] = in[(i - shift) mod N],
    # so shift = (-d) % W gives out[w] = in[(w + d) mod W]; mask the wrap column.
    rolled = pltpu.roll(x, shift=(-d) % W, axis=1)
    col = jax.lax.broadcasted_iota(jnp.int32, (1, W, 1), 1)
    valid = (col < W - 1) if d == 1 else (col >= 1)
    return jnp.where(valid, rolled, jnp.zeros_like(rolled))


# ------------------------------------------------------------------- kernel --
def _bottleneck_kernel(has_proj, x_ref, xt_ref, xb_ref,
                       w1_ref, b1_ref, w2_ref, b2_ref, w3_ref, b3_ref,
                       *rest):
    """One (batch element, row tile). All weights BN-folded, bf16; biases f32."""
    if has_proj:
        ws_ref, bs_ref, out_ref, acc_ref = rest
    else:
        out_ref, acc_ref = rest

    _, TH, W, Cin = x_ref.shape
    P = w1_ref.shape[1]
    Cout = w3_ref.shape[1]
    cdt = w1_ref.dtype                                  # MXU compute dtype (bf16)

    h_idx = pl.program_id(1)
    n_h = pl.num_programs(1)

    # ---- gather the row tile + 1 halo row on each side (from BlockSpecs) ----
    x_mid = x_ref[...].reshape(TH, W, Cin)
    x_top = xt_ref[...].reshape(1, W, Cin)
    x_bot = xb_ref[...].reshape(1, W, Cin)
    x_ext = jnp.concatenate([x_top, x_mid, x_bot], axis=0)      # (TH+2, W, Cin)

    # ---- conv1 (1x1, BN folded into weights) + bias + relu -------------------
    h1 = jnp.dot(x_ext.reshape((TH + 2) * W, Cin), w1_ref[...],
                 preferred_element_type=jnp.float32)
    h1 = jnp.maximum(h1 + b1_ref[...], 0.0).reshape(TH + 2, W, P)

    # conv2's zero padding in H: halo rows are zero at the image border.
    row = jax.lax.broadcasted_iota(jnp.int32, (TH + 2, 1, 1), 0)
    pad = jnp.logical_or(jnp.logical_and(row == 0, h_idx == 0),
                         jnp.logical_and(row == TH + 1, h_idx == n_h - 1))
    h1 = jnp.where(pad, 0.0, h1)

    # ---- conv2 (3x3, pad=1, BN folded) + bias + relu --------------------------
    # 3 W-shifted copies (pltpu.roll + edge mask) x 3 leading-dim row windows,
    # accumulated into an f32 VMEM scratch initialized with the folded bias.
    acc_ref[...] = jnp.broadcast_to(b2_ref[...], (TH * W, P))
    w2 = w2_ref[...]
    for dj in range(3):
        sh = _shift_w(h1, dj - 1, W).astype(cdt)                 # (TH+2, W, P)
        for di in range(3):
            win = sh[di:di + TH].reshape(TH * W, P)              # cheap leading-dim slice
            acc_ref[...] += jnp.dot(win, w2[di, dj],
                                    preferred_element_type=jnp.float32)
    h2 = jnp.maximum(acc_ref[...], 0.0).astype(cdt)              # (TH*W, P)

    # ---- conv3 (1x1, BN folded) + bias ----------------------------------------
    h3 = jnp.dot(h2, w3_ref[...], preferred_element_type=jnp.float32) + b3_ref[...]

    # ---- shortcut --------------------------------------------------------------
    x2d = x_mid.reshape(TH * W, Cin)
    if has_proj:
        sc = jnp.dot(x2d, ws_ref[...],
                     preferred_element_type=jnp.float32) + bs_ref[...]
    else:
        sc = x2d.astype(jnp.float32)         # identity (Cin == Cout, stride == 1)

    y = jnp.maximum(h3 + sc, 0.0)
    out_ref[...] = y.reshape(1, TH, W, Cout).astype(out_ref.dtype)


# ------------------------------------------------------------------ wrapper --
def _fold(w, s, dtype):
    """Fold eval-mode BN scale into conv weights, cast to MXU compute dtype."""
    return (w.astype(jnp.float32) * s.astype(jnp.float32)).astype(dtype)


def bottleneck_forward(x_nchw, params, stride=1, block_rows=8,
                       compute_dtype=jnp.bfloat16):
    assert stride == 1, "only stride=1 is supported in the Pallas kernel"
    # TODO(synk): stride > 1 needs strided output sampling in conv2/shortcut.

    x = jnp.transpose(x_nchw, (0, 2, 3, 1))             # NCHW -> NHWC
    N, H, W, Cin = x.shape
    P = params["w1"].shape[1]
    Cout = params["w3"].shape[1]
    has_proj = "ws" in params
    if not has_proj:
        assert Cin == Cout, "identity shortcut requires Cin == Cout"

    TH = min(block_rows, H)
    assert H % TH == 0, "H must be divisible by the row-tile size"
    n_h = H // TH

    # BN folded into weights (bf16); biases stay f32.
    w1f = _fold(params["w1"], params["s1"], compute_dtype)
    w2f = _fold(params["w2"], params["s2"].reshape(1, 1, 1, -1), compute_dtype)
    w3f = _fold(params["w3"], params["s3"], compute_dtype)
    b1 = params["b1"].astype(jnp.float32)
    b2 = params["b2"].astype(jnp.float32)
    b3 = params["b3"].astype(jnp.float32)
    xc = x.astype(compute_dtype)

    def const_spec(shape):                      # weights/biases: resident block
        return pl.BlockSpec(shape, lambda n, h: (0,) * len(shape))

    in_specs = [
        # row tile + two single-row halo views of the same input array
        pl.BlockSpec((1, TH, W, Cin), lambda n, h: (n, h, 0, 0)),
        pl.BlockSpec((1, 1, W, Cin),
                     lambda n, h: (n, jnp.maximum(h * TH - 1, 0), 0, 0)),
        pl.BlockSpec((1, 1, W, Cin),
                     lambda n, h: (n, jnp.minimum(h * TH + TH, H - 1), 0, 0)),
        const_spec((Cin, P)), const_spec((1, P)),
        const_spec((3, 3, P, P)), const_spec((1, P)),
        const_spec((P, Cout)), const_spec((1, Cout)),
    ]
    inputs = [xc, xc, xc, w1f, b1, w2f, b2, w3f, b3]
    if has_proj:
        wsf = _fold(params["ws"], params["ss"], compute_dtype)
        bs = params["bs"].astype(jnp.float32)
        in_specs += [const_spec((Cin, Cout)), const_spec((1, Cout))]
        inputs += [wsf, bs]

    out_spec = pl.BlockSpec((1, TH, W, Cout), lambda n, h: (n, h, 0, 0))

    flops = 2 * N * H * W * (Cin * P + 9 * P * P + P * Cout
                             + (Cin * Cout if has_proj else 0))
    bytes_accessed = int(xc.size) * xc.dtype.itemsize \
        + N * H * W * Cout * 4 \
        + sum(int(a.size) * a.dtype.itemsize for a in inputs[3:])

    kernel = functools.partial(_bottleneck_kernel, has_proj)

    out = pl.pallas_call(
        kernel,
        out_shape=jax.ShapeDtypeStruct((N, H, W, Cout), jnp.float32),
        grid_spec=pltpu.PrefetchScalarGridSpec(
            num_scalar_prefetch=0,
            grid=(N, n_h),
            in_specs=in_specs,
            out_specs=out_spec,
            scratch_shapes=[pltpu.VMEM((TH * W, P), jnp.float32)]),
        compiler_params=pltpu.CompilerParams(
            dimension_semantics=("parallel", "parallel"),
            vmem_limit_bytes=32 * 1024 * 1024),
        cost_estimate=pl.CostEstimate(flops=flops, transcendentals=0,
                                      bytes_accessed=bytes_accessed),
    )(*inputs)

    return jnp.transpose(out, (0, 3, 1, 2))              # NHWC -> NCHW


# ------------------------------------------------------ parameters (synth) ---
def make_params(key, in_planes, planes, stride=1, dtype=jnp.float32):
    """Deterministic synthetic weights + eval-mode BN folded to scale/bias."""
    expansion = 4
    cout = expansion * planes
    eps = 1e-5
    keys = iter(jax.random.split(key, 32))

    def conv_w(shape, fan_in):
        return (jax.random.normal(next(keys), shape, dtype=jnp.float32)
                * (2.0 / fan_in) ** 0.5).astype(dtype)

    def bn(c):
        gamma = jax.random.uniform(next(keys), (c,), minval=0.5, maxval=1.5)
        beta = 0.1 * jax.random.normal(next(keys), (c,))
        rmean = 0.1 * jax.random.normal(next(keys), (c,))
        rvar = jax.random.uniform(next(keys), (c,), minval=0.5, maxval=1.5)
        scale = gamma / jnp.sqrt(rvar + eps)
        bias = beta - rmean * scale
        return (scale.reshape(1, c).astype(dtype),
                bias.reshape(1, c).astype(dtype))

    params = {}
    params["w1"] = conv_w((in_planes, planes), in_planes)          # 1x1 as (Cin, P)
    params["s1"], params["b1"] = bn(planes)
    params["w2"] = conv_w((3, 3, planes, planes), 9 * planes)      # HWIO
    params["s2"], params["b2"] = bn(planes)
    params["w3"] = conv_w((planes, cout), planes)                  # 1x1 as (P, Cout)
    params["s3"], params["b3"] = bn(cout)
    if stride != 1 or in_planes != cout:
        params["ws"] = conv_w((in_planes, cout), in_planes)        # 1x1 as (Cin, Cout)
        params["ss"], params["bs"] = bn(cout)
    return params


# ----------------------------------------------------- pure-JAX reference ---
def reference_forward(x_nchw, params, stride=1):
    x = jnp.transpose(x_nchw, (0, 2, 3, 1))
    dn = ("NHWC", "HWIO", "NHWC")

    def conv(h, w, s, pad):
        return jax.lax.conv_general_dilated(h, w, (s, s), pad, dimension_numbers=dn)

    def aff(h, s, b):
        return h * s.reshape(1, 1, 1, -1) + b.reshape(1, 1, 1, -1)

    w1 = params["w1"].reshape(1, 1, *params["w1"].shape)
    w3 = params["w3"].reshape(1, 1, *params["w3"].shape)

    h = jnp.maximum(aff(conv(x, w1, 1, "VALID"), params["s1"], params["b1"]), 0.0)
    h = jnp.maximum(aff(conv(h, params["w2"], stride, [(1, 1), (1, 1)]),
                        params["s2"], params["b2"]), 0.0)
    h = aff(conv(h, w3, 1, "VALID"), params["s3"], params["b3"])
    if "ws" in params:
        ws = params["ws"].reshape(1, 1, *params["ws"].shape)
        sc = aff(conv(x, ws, stride, "VALID"), params["ss"], params["bs"])
    else:
        sc = x
    out = jnp.maximum(h + sc, 0.0)
    return jnp.transpose(out, (0, 3, 1, 2))


# -------------------------------------------------------------------- main ---
if __name__ == "__main__":
    key = jax.random.PRNGKey(0)
    kx, kp, kx2, kp2 = jax.random.split(key, 4)

    # Bottleneck(in_planes=4, planes=4, stride=1) -> projection shortcut (4 -> 16)
    N, in_planes, planes, H, W = 2, 4, 4, 16, 16
    x = jax.random.normal(kx, (N, in_planes, H, W), dtype=jnp.float32)
    params = make_params(kp, in_planes, planes, stride=1)

    out = jax.block_until_ready(bottleneck_forward(x, params))
    assert out.shape == (N, 4 * planes, H, W), out.shape

    ref = reference_forward(x, params)
    # bf16 MXU operands -> tolerance sized for bf16 rounding through 3 convs.
    if not bool(jnp.allclose(out, ref, rtol=5e-2, atol=6e-2)):
        err = float(jnp.max(jnp.abs(out - ref)))
        raise AssertionError(f"projection-shortcut mismatch (max |err| = {err:.4f})")

    # Bottleneck(in_planes=16, planes=4, stride=1) -> identity shortcut
    x2 = jax.random.normal(kx2, (N, 16, H, W), dtype=jnp.float32)
    params2 = make_params(kp2, 16, planes, stride=1)
    out2 = jax.block_until_ready(bottleneck_forward(x2, params2))
    ref2 = reference_forward(x2, params2)
    if not bool(jnp.allclose(out2, ref2, rtol=5e-2, atol=6e-2)):
        err = float(jnp.max(jnp.abs(out2 - ref2)))
        raise AssertionError(f"identity-shortcut mismatch (max |err| = {err:.4f})")

    print("KERNEL_OK")
</pallas_src>

<mosaic_0001>
module attributes {stable_mosaic.version = 11 : i64} {
  func.func @_bottleneck_kernel(%arg0: i32, %arg1: i32, %arg2: memref<1x8x16x4xbf16, #tpu.memory_space<vmem>>, %arg3: memref<1x1x16x4xbf16, #tpu.memory_space<vmem>>, %arg4: memref<1x1x16x4xbf16, #tpu.memory_space<vmem>>, %arg5: memref<4x4xbf16, #tpu.memory_space<vmem>>, %arg6: memref<1x4xf32, #tpu.memory_space<vmem>>, %arg7: memref<3x3x4x4xbf16, #tpu.memory_space<vmem>>, %arg8: memref<1x4xf32, #tpu.memory_space<vmem>>, %arg9: memref<4x16xbf16, #tpu.memory_space<vmem>>, %arg10: memref<1x16xf32, #tpu.memory_space<vmem>>, %arg11: memref<4x16xbf16, #tpu.memory_space<vmem>>, %arg12: memref<1x16xf32, #tpu.memory_space<vmem>>, %arg13: memref<1x8x16x16xf32, #tpu.memory_space<vmem>>, %arg14: memref<128x4xf32, #tpu.memory_space<vmem>>) attributes {dimension_semantics = [#tpu.dimension_semantics<parallel>, #tpu.dimension_semantics<parallel>], iteration_bounds = array<i64: 2, 2>, scalar_prefetch = 0 : i64, scratch_operands = 1 : i64, tpu.core_type = #tpu.core_type<tc>, window_params = [{transform_indices = @transform_0, window_bounds = array<i64: 1, 8, 16, 4>}, {transform_indices = @transform_1, window_bounds = array<i64: 1, 1, 16, 4>}, {transform_indices = @transform_2, window_bounds = array<i64: 1, 1, 16, 4>}, {pipeline_mode = #tpu.pipeline_mode<synchronous>, transform_indices = @transform_3, window_bounds = array<i64: 4, 4>}, {pipeline_mode = #tpu.pipeline_mode<synchronous>, transform_indices = @transform_4, window_bounds = array<i64: 1, 4>}, {pipeline_mode = #tpu.pipeline_mode<synchronous>, transform_indices = @transform_5, window_bounds = array<i64: 3, 3, 4, 4>}, {pipeline_mode = #tpu.pipeline_mode<synchronous>, transform_indices = @transform_6, window_bounds = array<i64: 1, 4>}, {pipeline_mode = #tpu.pipeline_mode<synchronous>, transform_indices = @transform_7, window_bounds = array<i64: 4, 16>}, {pipeline_mode = #tpu.pipeline_mode<synchronous>, transform_indices = @transform_8, window_bounds = array<i64: 1, 16>}, {pipeline_mode = #tpu.pipeline_mode<synchronous>, transform_indices = @transform_9, window_bounds = array<i64: 4, 16>}, {pipeline_mode = #tpu.pipeline_mode<synchronous>, transform_indices = @transform_10, window_bounds = array<i64: 1, 16>}, {transform_indices = @transform_11, window_bounds = array<i64: 1, 8, 16, 16>}]} {
    %c0 = arith.constant 0 : index
    %c0_0 = arith.constant 0 : index
    %c0_1 = arith.constant 0 : index
    %c0_2 = arith.constant 0 : index
    %0 = vector.load %arg2[%c0, %c0_0, %c0_1, %c0_2] : memref<1x8x16x4xbf16, #tpu.memory_space<vmem>>, vector<1x8x16x4xbf16>
    %1 = vector.shape_cast %0 : vector<1x8x16x4xbf16> to vector<8x16x4xbf16>
    %c0_3 = arith.constant 0 : index
    %c0_4 = arith.constant 0 : index
    %c0_5 = arith.constant 0 : index
    %c0_6 = arith.constant 0 : index
    %2 = vector.load %arg3[%c0_3, %c0_4, %c0_5, %c0_6] : memref<1x1x16x4xbf16, #tpu.memory_space<vmem>>, vector<1x1x16x4xbf16>
    %3 = vector.shape_cast %2 : vector<1x1x16x4xbf16> to vector<1x16x4xbf16>
    %c0_7 = arith.constant 0 : index
    %c0_8 = arith.constant 0 : index
    %c0_9 = arith.constant 0 : index
    %c0_10 = arith.constant 0 : index
    %4 = vector.load %arg4[%c0_7, %c0_8, %c0_9, %c0_10] : memref<1x1x16x4xbf16, #tpu.memory_space<vmem>>, vector<1x1x16x4xbf16>
    %5 = vector.shape_cast %4 : vector<1x1x16x4xbf16> to vector<1x16x4xbf16>
    %6 = tpu.concatenate %3, %1, %5 in 0 : vector<1x16x4xbf16>, vector<8x16x4xbf16>, vector<1x16x4xbf16> -> vector<10x16x4xbf16>
    %7 = vector.shape_cast %6 : vector<10x16x4xbf16> to vector<160x4xbf16>
    %c0_11 = arith.constant 0 : index
    %c0_12 = arith.constant 0 : index
    %8 = vector.load %arg5[%c0_11, %c0_12] : memref<4x4xbf16, #tpu.memory_space<vmem>>, vector<4x4xbf16>
    %cst = arith.constant dense<0.000000e+00> : vector<160x4xf32>
    %9 = tpu.matmul %7, %8, %cst {dimension_numbers = #tpu.dot_dimension_numbers<[1], [0], [0], [1], [0, 0, 1, 1], [], []>} : vector<160x4xbf16>, vector<4x4xbf16>, vector<160x4xf32> -> vector<160x4xf32>
    %c0_13 = arith.constant 0 : index
    %c0_14 = arith.constant 0 : index
    %10 = vector.load %arg6[%c0_13, %c0_14] : memref<1x4xf32, #tpu.memory_space<vmem>>, vector<1x4xf32>
    %11 = vector.broadcast %10 : vector<1x4xf32> to vector<160x4xf32>
    %12 = arith.addf %9, %11 : vector<160x4xf32>
    %cst_15 = arith.constant 0.000000e+00 : f32
    %13 = vector.broadcast %cst_15 : f32 to vector<160x4xf32>
    %14 = arith.maximumf %12, %13 : vector<160x4xf32>
    %15 = vector.shape_cast %14 : vector<160x4xf32> to vector<10x16x4xf32>
    %16 = tpu.iota {dimensions = array<i32: 0>} : vector<10x1x1xi32>
    %c0_i32 = arith.constant 0 : i32
    %17 = vector.broadcast %c0_i32 : i32 to vector<10x1x1xi32>
    %18 = arith.cmpi eq, %16, %17 : vector<10x1x1xi32>
    %c0_i32_16 = arith.constant 0 : i32
    %19 = arith.cmpi eq, %arg1, %c0_i32_16 : i32
    %20 = vector.broadcast %19 : i1 to vector<10x1x1xi1>
    %21 = arith.andi %18, %20 : vector<10x1x1xi1>
    %c9_i32 = arith.constant 9 : i32
    %22 = vector.broadcast %c9_i32 : i32 to vector<10x1x1xi32>
    %23 = arith.cmpi eq, %16, %22 : vector<10x1x1xi32>
    %c1_i32 = arith.constant 1 : i32
    %24 = arith.cmpi eq, %arg1, %c1_i32 : i32
    %25 = vector.broadcast %24 : i1 to vector<10x1x1xi1>
    %26 = arith.andi %23, %25 : vector<10x1x1xi1>
    %27 = arith.ori %21, %26 : vector<10x1x1xi1>
    %cst_17 = arith.constant 0.000000e+00 : f32
    %28 = vector.shape_cast %27 : vector<10x1x1xi1> to vector<10x1x1xi1>
    %29 = vector.broadcast %28 : vector<10x1x1xi1> to vector<10x16x4xi1>
    %30 = vector.broadcast %cst_17 : f32 to vector<10x16x4xf32>
    %31 = arith.select %29, %30, %15 : vector<10x16x4xi1>, vector<10x16x4xf32>
    %c0_18 = arith.constant 0 : index
    %c0_19 = arith.constant 0 : index
    %32 = vector.load %arg8[%c0_18, %c0_19] : memref<1x4xf32, #tpu.memory_space<vmem>>, vector<1x4xf32>
    %33 = vector.shape_cast %32 : vector<1x4xf32> to vector<1x4xf32>
    %34 = vector.broadcast %33 : vector<1x4xf32> to vector<128x4xf32>
    %c0_20 = arith.constant 0 : index
    %c0_21 = arith.constant 0 : index
    %35 = vector.load %arg14[%c0_20, %c0_21] : memref<128x4xf32, #tpu.memory_space<vmem>>, vector<128x4xf32>
    tpu.vector_store %arg14[%c0_20, %c0_21], %34 {strides = array<i32>} : memref<128x4xf32, #tpu.memory_space<vmem>>, vector<128x4xf32>,
    %c0_22 = arith.constant 0 : index
    %c0_23 = arith.constant 0 : index
    %c0_24 = arith.constant 0 : index
    %c0_25 = arith.constant 0 : index
    %36 = vector.load %arg7[%c0_22, %c0_23, %c0_24, %c0_25] : memref<3x3x4x4xbf16, #tpu.memory_space<vmem>>, vector<3x3x4x4xbf16>
    %c1_i32_26 = arith.constant 1 : i32
    %37 = tpu.dynamic_rotate %31 by %c1_i32_26 dim 1 : vector<10x16x4xf32>, i32 -> vector<10x16x4xf32>
    %38 = tpu.iota {dimensions = array<i32: 1>} : vector<1x16x1xi32>
    %c1_i32_27 = arith.constant 1 : i32
    %39 = vector.broadcast %c1_i32_27 : i32 to vector<1x16x1xi32>
    %40 = arith.cmpi sge, %38, %39 : vector<1x16x1xi32>
    %cst_28 = arith.constant 0.000000e+00 : f32
    %41 = vector.broadcast %cst_28 : f32 to vector<10x16x4xf32>
    %42 = vector.shape_cast %40 : vector<1x16x1xi1> to vector<1x16x1xi1>
    %43 = vector.broadcast %42 : vector<1x16x1xi1> to vector<10x16x4xi1>
    %44 = arith.select %43, %37, %41 : vector<10x16x4xi1>, vector<10x16x4xf32>
    %45 = arith.truncf %44 : vector<10x16x4xf32> to vector<10x16x4xbf16>
    %46 = vector.extract_strided_slice %45 {offsets = [0, 0, 0], sizes = [8, 16, 4], strides = [1, 1, 1]} : vector<10x16x4xbf16> to vector<8x16x4xbf16>
    %47 = vector.shape_cast %46 : vector<8x16x4xbf16> to vector<128x4xbf16>
    %c0_29 = arith.constant 0 : index
    %c0_30 = arith.constant 0 : index
    %48 = vector.load %arg14[%c0_29, %c0_30] : memref<128x4xf32, #tpu.memory_space<vmem>>, vector<128x4xf32>
    %49 = vector.extract_strided_slice %36 {offsets = [0, 0, 0, 0], sizes = [1, 1, 4, 4], strides = [1, 1, 1, 1]} : vector<3x3x4x4xbf16> to vector<1x1x4x4xbf16>
    %50 = vector.shape_cast %49 : vector<1x1x4x4xbf16> to vector<4x4xbf16>
    %cst_31 = arith.constant dense<0.000000e+00> : vector<128x4xf32>
    %51 = tpu.matmul %47, %50, %cst_31 {dimension_numbers = #tpu.dot_dimension_numbers<[1], [0], [0], [1], [0, 0, 1, 1], [], []>} : vector<128x4xbf16>, vector<4x4xbf16>, vector<128x4xf32> -> vector<128x4xf32>
    %52 = arith.addf %48, %51 : vector<128x4xf32>
    %c0_32 = arith.constant 0 : index
    %c0_33 = arith.constant 0 : index
    %53 = vector.load %arg14[%c0_32, %c0_33] : memref<128x4xf32, #tpu.memory_space<vmem>>, vector<128x4xf32>
    tpu.vector_store %arg14[%c0_32, %c0_33], %52 {strides = array<i32>} : memref<128x4xf32, #tpu.memory_space<vmem>>, vector<128x4xf32>,
    %54 = vector.extract_strided_slice %45 {offsets = [1, 0, 0], sizes = [8, 16, 4], strides = [1, 1, 1]} : vector<10x16x4xbf16> to vector<8x16x4xbf16>
    %55 = vector.shape_cast %54 : vector<8x16x4xbf16> to vector<128x4xbf16>
    %c0_34 = arith.constant 0 : index
    %c0_35 = arith.constant 0 : index
    %56 = vector.load %arg14[%c0_34, %c0_35] : memref<128x4xf32, #tpu.memory_space<vmem>>, vector<128x4xf32>
    %57 = vector.extract_strided_slice %36 {offsets = [1, 0, 0, 0], sizes = [1, 1, 4, 4], strides = [1, 1, 1, 1]} : vector<3x3x4x4xbf16> to vector<1x1x4x4xbf16>
    %58 = vector.shape_cast %57 : vector<1x1x4x4xbf16> to vector<4x4xbf16>
    %cst_36 = arith.constant dense<0.000000e+00> : vector<128x4xf32>
    %59 = tpu.matmul %55, %58, %cst_36 {dimension_numbers = #tpu.dot_dimension_numbers<[1], [0], [0], [1], [0, 0, 1, 1], [], []>} : vector<128x4xbf16>, vector<4x4xbf16>, vector<128x4xf32> -> vector<128x4xf32>
    %60 = arith.addf %56, %59 : vector<128x4xf32>
    %c0_37 = arith.constant 0 : index
    %c0_38 = arith.constant 0 : index
    %61 = vector.load %arg14[%c0_37, %c0_38] : memref<128x4xf32, #tpu.memory_space<vmem>>, vector<128x4xf32>
    tpu.vector_store %arg14[%c0_37, %c0_38], %60 {strides = array<i32>} : memref<128x4xf32, #tpu.memory_space<vmem>>, vector<128x4xf32>,
    %62 = vector.extract_strided_slice %45 {offsets = [2, 0, 0], sizes = [8, 16, 4], strides = [1, 1, 1]} : vector<10x16x4xbf16> to vector<8x16x4xbf16>
    %63 = vector.shape_cast %62 : vector<8x16x4xbf16> to vector<128x4xbf16>
    %c0_39 = arith.constant 0 : index
    %c0_40 = arith.constant 0 : index
    %64 = vector.load %arg14[%c0_39, %c0_40] : memref<128x4xf32, #tpu.memory_space<vmem>>, vector<128x4xf32>
    %65 = vector.extract_strided_slice %36 {offsets = [2, 0, 0, 0], sizes = [1, 1, 4, 4], strides = [1, 1, 1, 1]} : vector<3x3x4x4xbf16> to vector<1x1x4x4xbf16>
    %66 = vector.shape_cast %65 : vector<1x1x4x4xbf16> to vector<4x4xbf16>
    %cst_41 = arith.constant dense<0.000000e+00> : vector<128x4xf32>
    %67 = tpu.matmul %63, %66, %cst_41 {dimension_numbers = #tpu.dot_dimension_numbers<[1], [0], [0], [1], [0, 0, 1, 1], [], []>} : vector<128x4xbf16>, vector<4x4xbf16>, vector<128x4xf32> -> vector<128x4xf32>
    %68 = arith.addf %64, %67 : vector<128x4xf32>
    %c0_42 = arith.constant 0 : index
    %c0_43 = arith.constant 0 : index
    %69 = vector.load %arg14[%c0_42, %c0_43] : memref<128x4xf32, #tpu.memory_space<vmem>>, vector<128x4xf32>
    tpu.vector_store %arg14[%c0_42, %c0_43], %68 {strides = array<i32>} : memref<128x4xf32, #tpu.memory_space<vmem>>, vector<128x4xf32>,
    %70 = arith.truncf %31 : vector<10x16x4xf32> to vector<10x16x4xbf16>
    %71 = vector.extract_strided_slice %70 {offsets = [0, 0, 0], sizes = [8, 16, 4], strides = [1, 1, 1]} : vector<10x16x4xbf16> to vector<8x16x4xbf16>
    %72 = vector.shape_cast %71 : vector<8x16x4xbf16> to vector<128x4xbf16>
    %c0_44 = arith.constant 0 : index
    %c0_45 = arith.constant 0 : index
    %73 = vector.load %arg14[%c0_44, %c0_45] : memref<128x4xf32, #tpu.memory_space<vmem>>, vector<128x4xf32>
    %74 = vector.extract_strided_slice %36 {offsets = [0, 1, 0, 0], sizes = [1, 1, 4, 4], strides = [1, 1, 1, 1]} : vector<3x3x4x4xbf16> to vector<1x1x4x4xbf16>
    %75 = vector.shape_cast %74 : vector<1x1x4x4xbf16> to vector<4x4xbf16>
    %cst_46 = arith.constant dense<0.000000e+00> : vector<128x4xf32>
    %76 = tpu.matmul %72, %75, %cst_46 {dimension_numbers = #tpu.dot_dimension_numbers<[1], [0], [0], [1], [0, 0, 1, 1], [], []>} : vector<128x4xbf16>, vector<4x4xbf16>, vector<128x4xf32> -> vector<128x4xf32>
    %77 = arith.addf %73, %76 : vector<128x4xf32>
    %c0_47 = arith.constant 0 : index
    %c0_48 = arith.constant 0 : index
    %78 = vector.load %arg14[%c0_47, %c0_48] : memref<128x4xf32, #tpu.memory_space<vmem>>, vector<128x4xf32>
    tpu.vector_store %arg14[%c0_47, %c0_48], %77 {strides = array<i32>} : memref<128x4xf32, #tpu.memory_space<vmem>>, vector<128x4xf32>,
    %79 = vector.extract_strided_slice %70 {offsets = [1, 0, 0], sizes = [8, 16, 4], strides = [1, 1, 1]} : vector<10x16x4xbf16> to vector<8x16x4xbf16>
    %80 = vector.shape_cast %79 : vector<8x16x4xbf16> to vector<128x4xbf16>
    %c0_49 = arith.constant 0 : index
    %c0_50 = arith.constant 0 : index
    %81 = vector.load %arg14[%c0_49, %c0_50] : memref<128x4xf32, #tpu.memory_space<vmem>>, vector<128x4xf32>
    %82 = vector.extract_strided_slice %36 {offsets = [1, 1, 0, 0], sizes = [1, 1, 4, 4], strides = [1, 1, 1, 1]} : vector<3x3x4x4xbf16> to vector<1x1x4x4xbf16>
    %83 = vector.shape_cast %82 : vector<1x1x4x4xbf16> to vector<4x4xbf16>
    %cst_51 = arith.constant dense<0.000000e+00> : vector<128x4xf32>
    %84 = tpu.matmul %80, %83, %cst_51 {dimension_numbers = #tpu.dot_dimension_numbers<[1], [0], [0], [1], [0, 0, 1, 1], [], []>} : vector<128x4xbf16>, vector<4x4xbf16>, vector<128x4xf32> -> vector<128x4xf32>
    %85 = arith.addf %81, %84 : vector<128x4xf32>
    %c0_52 = arith.constant 0 : index
    %c0_53 = arith.constant 0 : index
    %86 = vector.load %arg14[%c0_52, %c0_53] : memref<128x4xf32, #tpu.memory_space<vmem>>, vector<128x4xf32>
    tpu.vector_store %arg14[%c0_52, %c0_53], %85 {strides = array<i32>} : memref<128x4xf32, #tpu.memory_space<vmem>>, vector<128x4xf32>,
    %87 = vector.extract_strided_slice %70 {offsets = [2, 0, 0], sizes = [8, 16, 4], strides = [1, 1, 1]} : vector<10x16x4xbf16> to vector<8x16x4xbf16>
    %88 = vector.shape_cast %87 : vector<8x16x4xbf16> to vector<128x4xbf16>
    %c0_54 = arith.constant 0 : index
    %c0_55 = arith.constant 0 : index
    %89 = vector.load %arg14[%c0_54, %c0_55] : memref<128x4xf32, #tpu.memory_space<vmem>>, vector<128x4xf32>
    %90 = vector.extract_strided_slice %36 {offsets = [2, 1, 0, 0], sizes = [1, 1, 4, 4], strides = [1, 1, 1, 1]} : vector<3x3x4x4xbf16> to vector<1x1x4x4xbf16>
    %91 = vector.shape_cast %90 : vector<1x1x4x4xbf16> to vector<4x4xbf16>
    %cst_56 = arith.constant dense<0.000000e+00> : vector<128x4xf32>
    %92 = tpu.matmul %88, %91, %cst_56 {dimension_numbers = #tpu.dot_dimension_numbers<[1], [0], [0], [1], [0, 0, 1, 1], [], []>} : vector<128x4xbf16>, vector<4x4xbf16>, vector<128x4xf32> -> vector<128x4xf32>
    %93 = arith.addf %89, %92 : vector<128x4xf32>
    %c0_57 = arith.constant 0 : index
    %c0_58 = arith.constant 0 : index
    %94 = vector.load %arg14[%c0_57, %c0_58] : memref<128x4xf32, #tpu.memory_space<vmem>>, vector<128x4xf32>
    tpu.vector_store %arg14[%c0_57, %c0_58], %93 {strides = array<i32>} : memref<128x4xf32, #tpu.memory_space<vmem>>, vector<128x4xf32>,
    %c15_i32 = arith.constant 15 : i32
    %95 = tpu.dynamic_rotate %31 by %c15_i32 dim 1 : vector<10x16x4xf32>, i32 -> vector<10x16x4xf32>
    %96 = tpu.iota {dimensions = array<i32: 1>} : vector<1x16x1xi32>
    %c15_i32_59 = arith.constant 15 : i32
    %97 = vector.broadcast %c15_i32_59 : i32 to vector<1x16x1xi32>
    %98 = arith.cmpi slt, %96, %97 : vector<1x16x1xi32>
    %cst_60 = arith.constant 0.000000e+00 : f32
    %99 = vector.broadcast %cst_60 : f32 to vector<10x16x4xf32>
    %100 = vector.shape_cast %98 : vector<1x16x1xi1> to vector<1x16x1xi1>
    %101 = vector.broadcast %100 : vector<1x16x1xi1> to vector<10x16x4xi1>
    %102 = arith.select %101, %95, %99 : vector<10x16x4xi1>, vector<10x16x4xf32>
    %103 = arith.truncf %102 : vector<10x16x4xf32> to vector<10x16x4xbf16>
    %104 = vector.extract_strided_slice %103 {offsets = [0, 0, 0], sizes = [8, 16, 4], strides = [1, 1, 1]} : vector<10x16x4xbf16> to vector<8x16x4xbf16>
    %105 = vector.shape_cast %104 : vector<8x16x4xbf16> to vector<128x4xbf16>
    %c0_61 = arith.constant 0 : index
    %c0_62 = arith.constant 0 : index
    %106 = vector.load %arg14[%c0_61, %c0_62] : memref<128x4xf32, #tpu.memory_space<vmem>>, vector<128x4xf32>
    %107 = vector.extract_strided_slice %36 {offsets = [0, 2, 0, 0], sizes = [1, 1, 4, 4], strides = [1, 1, 1, 1]} : vector<3x3x4x4xbf16> to vector<1x1x4x4xbf16>
    %108 = vector.shape_cast %107 : vector<1x1x4x4xbf16> to vector<4x4xbf16>
    %cst_63 = arith.constant dense<0.000000e+00> : vector<128x4xf32>
    %109 = tpu.matmul %105, %108, %cst_63 {dimension_numbers = #tpu.dot_dimension_numbers<[1], [0], [0], [1], [0, 0, 1, 1], [], []>} : vector<128x4xbf16>, vector<4x4xbf16>, vector<128x4xf32> -> vector<128x4xf32>
    %110 = arith.addf %106, %109 : vector<128x4xf32>
    %c0_64 = arith.constant 0 : index
    %c0_65 = arith.constant 0 : index
    %111 = vector.load %arg14[%c0_64, %c0_65] : memref<128x4xf32, #tpu.memory_space<vmem>>, vector<128x4xf32>
    tpu.vector_store %arg14[%c0_64, %c0_65], %110 {strides = array<i32>} : memref<128x4xf32, #tpu.memory_space<vmem>>, vector<128x4xf32>,
    %112 = vector.extract_strided_slice %103 {offsets = [1, 0, 0], sizes = [8, 16, 4], strides = [1, 1, 1]} : vector<10x16x4xbf16> to vector<8x16x4xbf16>
    %113 = vector.shape_cast %112 : vector<8x16x4xbf16> to vector<128x4xbf16>
    %c0_66 = arith.constant 0 : index
    %c0_67 = arith.constant 0 : index
    %114 = vector.load %arg14[%c0_66, %c0_67] : memref<128x4xf32, #tpu.memory_space<vmem>>, vector<128x4xf32>
    %115 = vector.extract_strided_slice %36 {offsets = [1, 2, 0, 0], sizes = [1, 1, 4, 4], strides = [1, 1, 1, 1]} : vector<3x3x4x4xbf16> to vector<1x1x4x4xbf16>
    %116 = vector.shape_cast %115 : vector<1x1x4x4xbf16> to vector<4x4xbf16>
    %cst_68 = arith.constant dense<0.000000e+00> : vector<128x4xf32>
    %117 = tpu.matmul %113, %116, %cst_68 {dimension_numbers = #tpu.dot_dimension_numbers<[1], [0], [0], [1], [0, 0, 1, 1], [], []>} : vector<128x4xbf16>, vector<4x4xbf16>, vector<128x4xf32> -> vector<128x4xf32>
    %118 = arith.addf %114, %117 : vector<128x4xf32>
    %c0_69 = arith.constant 0 : index
    %c0_70 = arith.constant 0 : index
    %119 = vector.load %arg14[%c0_69, %c0_70] : memref<128x4xf32, #tpu.memory_space<vmem>>, vector<128x4xf32>
    tpu.vector_store %arg14[%c0_69, %c0_70], %118 {strides = array<i32>} : memref<128x4xf32, #tpu.memory_space<vmem>>, vector<128x4xf32>,
    %120 = vector.extract_strided_slice %103 {offsets = [2, 0, 0], sizes = [8, 16, 4], strides = [1, 1, 1]} : vector<10x16x4xbf16> to vector<8x16x4xbf16>
    %121 = vector.shape_cast %120 : vector<8x16x4xbf16> to vector<128x4xbf16>
    %c0_71 = arith.constant 0 : index
    %c0_72 = arith.constant 0 : index
    %122 = vector.load %arg14[%c0_71, %c0_72] : memref<128x4xf32, #tpu.memory_space<vmem>>, vector<128x4xf32>
    %123 = vector.extract_strided_slice %36 {offsets = [2, 2, 0, 0], sizes = [1, 1, 4, 4], strides = [1, 1, 1, 1]} : vector<3x3x4x4xbf16> to vector<1x1x4x4xbf16>
    %124 = vector.shape_cast %123 : vector<1x1x4x4xbf16> to vector<4x4xbf16>
    %cst_73 = arith.constant dense<0.000000e+00> : vector<128x4xf32>
    %125 = tpu.matmul %121, %124, %cst_73 {dimension_numbers = #tpu.dot_dimension_numbers<[1], [0], [0], [1], [0, 0, 1, 1], [], []>} : vector<128x4xbf16>, vector<4x4xbf16>, vector<128x4xf32> -> vector<128x4xf32>
    %126 = arith.addf %122, %125 : vector<128x4xf32>
    %c0_74 = arith.constant 0 : index
    %c0_75 = arith.constant 0 : index
    %127 = vector.load %arg14[%c0_74, %c0_75] : memref<128x4xf32, #tpu.memory_space<vmem>>, vector<128x4xf32>
    tpu.vector_store %arg14[%c0_74, %c0_75], %126 {strides = array<i32>} : memref<128x4xf32, #tpu.memory_space<vmem>>, vector<128x4xf32>,
    %c0_76 = arith.constant 0 : index
    %c0_77 = arith.constant 0 : index
    %128 = vector.load %arg14[%c0_76, %c0_77] : memref<128x4xf32, #tpu.memory_space<vmem>>, vector<128x4xf32>
    %cst_78 = arith.constant 0.000000e+00 : f32
    %129 = vector.broadcast %cst_78 : f32 to vector<128x4xf32>
    %130 = arith.maximumf %128, %129 : vector<128x4xf32>
    %131 = arith.truncf %130 : vector<128x4xf32> to vector<128x4xbf16>
    %c0_79 = arith.constant 0 : index
    %c0_80 = arith.constant 0 : index
    %132 = vector.load %arg9[%c0_79, %c0_80] : memref<4x16xbf16, #tpu.memory_space<vmem>>, vector<4x16xbf16>
    %cst_81 = arith.constant dense<0.000000e+00> : vector<128x16xf32>
    %133 = tpu.matmul %131, %132, %cst_81 {dimension_numbers = #tpu.dot_dimension_numbers<[1], [0], [0], [1], [0, 0, 1, 1], [], []>} : vector<128x4xbf16>, vector<4x16xbf16>, vector<128x16xf32> -> vector<128x16xf32>
    %c0_82 = arith.constant 0 : index
    %c0_83 = arith.constant 0 : index
    %134 = vector.load %arg10[%c0_82, %c0_83] : memref<1x16xf32, #tpu.memory_space<vmem>>, vector<1x16xf32>
    %135 = vector.broadcast %134 : vector<1x16xf32> to vector<128x16xf32>
    %136 = arith.addf %133, %135 : vector<128x16xf32>
    %137 = vector.shape_cast %1 : vector<8x16x4xbf16> to vector<128x4xbf16>
    %c0_84 = arith.constant 0 : index
    %c0_85 = arith.constant 0 : index
    %138 = vector.load %arg11[%c0_84, %c0_85] : memref<4x16xbf16, #tpu.memory_space<vmem>>, vector<4x16xbf16>
    %cst_86 = arith.constant dense<0.000000e+00> : vector<128x16xf32>
    %139 = tpu.matmul %137, %138, %cst_86 {dimension_numbers = #tpu.dot_dimension_numbers<[1], [0], [0], [1], [0, 0, 1, 1], [], []>} : vector<128x4xbf16>, vector<4x16xbf16>, vector<128x16xf32> -> vector<128x16xf32>
    %c0_87 = arith.constant 0 : index
    %c0_88 = arith.constant 0 : index
    %140 = vector.load %arg12[%c0_87, %c0_88] : memref<1x16xf32, #tpu.memory_space<vmem>>, vector<1x16xf32>
    %141 = vector.broadcast %140 : vector<1x16xf32> to vector<128x16xf32>
    %142 = arith.addf %139, %141 : vector<128x16xf32>
    %143 = arith.addf %136, %142 : vector<128x16xf32>
    %cst_89 = arith.constant 0.000000e+00 : f32
    %144 = vector.broadcast %cst_89 : f32 to vector<128x16xf32>
    %145 = arith.maximumf %143, %144 : vector<128x16xf32>
    %146 = vector.shape_cast %145 : vector<128x16xf32> to vector<1x8x16x16xf32>
    %c0_90 = arith.constant 0 : index
    %c0_91 = arith.constant 0 : index
    %c0_92 = arith.constant 0 : index
    %c0_93 = arith.constant 0 : index
    %147 = vector.load %arg13[%c0_90, %c0_91, %c0_92, %c0_93] : memref<1x8x16x16xf32, #tpu.memory_space<vmem>>, vector<1x8x16x16xf32>
    tpu.vector_store %arg13[%c0_90, %c0_91, %c0_92, %c0_93], %146 {strides = array<i32>} : memref<1x8x16x16xf32, #tpu.memory_space<vmem>>, vector<1x8x16x16xf32>,
    return
  }
  func.func @transform_0(%arg0: i32, %arg1: i32) -> (i32, i32, i32, i32) {
    %c0_i32 = arith.constant 0 : i32
    %c0_i32_0 = arith.constant 0 : i32
    %c0_i32_1 = arith.constant 0 : i32
    return %arg0, %arg1, %c0_i32, %c0_i32_0 : i32, i32, i32, i32
  }
  func.func @transform_1(%arg0: i32, %arg1: i32) -> (i32, i32, i32, i32) {
    %c8_i32 = arith.constant 8 : i32
    %0 = arith.muli %arg1, %c8_i32 : i32
    %c1_i32 = arith.constant 1 : i32
    %1 = arith.subi %0, %c1_i32 : i32
    %c0_i32 = arith.constant 0 : i32
    %2 = arith.maxsi %1, %c0_i32 : i32
    %c0_i32_0 = arith.constant 0 : i32
    %c0_i32_1 = arith.constant 0 : i32
    %c0_i32_2 = arith.constant 0 : i32
    return %arg0, %2, %c0_i32_0, %c0_i32_1 : i32, i32, i32, i32
  }
  func.func @transform_2(%arg0: i32, %arg1: i32) -> (i32, i32, i32, i32) {
    %c8_i32 = arith.constant 8 : i32
    %0 = arith.muli %arg1, %c8_i32 : i32
    %c8_i32_0 = arith.constant 8 : i32
    %1 = arith.addi %0, %c8_i32_0 : i32
    %c15_i32 = arith.constant 15 : i32
    %2 = arith.minsi %1, %c15_i32 : i32
    %c0_i32 = arith.constant 0 : i32
    %c0_i32_1 = arith.constant 0 : i32
    %c0_i32_2 = arith.constant 0 : i32
    return %arg0, %2, %c0_i32, %c0_i32_1 : i32, i32, i32, i32
  }
  func.func @transform_3(%arg0: i32, %arg1: i32) -> (i32, i32) {
    %c0_i32 = arith.constant 0 : i32
    %c0_i32_0 = arith.constant 0 : i32
    %c0_i32_1 = arith.constant 0 : i32
    return %c0_i32, %c0_i32_0 : i32, i32
  }
  func.func @transform_4(%arg0: i32, %arg1: i32) -> (i32, i32) {
    %c0_i32 = arith.constant 0 : i32
    %c0_i32_0 = arith.constant 0 : i32
    %c0_i32_1 = arith.constant 0 : i32
    return %c0_i32, %c0_i32_0 : i32, i32
  }
  func.func @transform_5(%arg0: i32, %arg1: i32) -> (i32, i32, i32, i32) {
    %c0_i32 = arith.constant 0 : i32
    %c0_i32_0 = arith.constant 0 : i32
    %c0_i32_1 = arith.constant 0 : i32
    %c0_i32_2 = arith.constant 0 : i32
    %c0_i32_3 = arith.constant 0 : i32
    return %c0_i32, %c0_i32_0, %c0_i32_1, %c0_i32_2 : i32, i32, i32, i32
  }
  func.func @transform_6(%arg0: i32, %arg1: i32) -> (i32, i32) {
    %c0_i32 = arith.constant 0 : i32
    %c0_i32_0 = arith.constant 0 : i32
    %c0_i32_1 = arith.constant 0 : i32
    return %c0_i32, %c0_i32_0 : i32, i32
  }
  func.func @transform_7(%arg0: i32, %arg1: i32) -> (i32, i32) {
    %c0_i32 = arith.constant 0 : i32
    %c0_i32_0 = arith.constant 0 : i32
    %c0_i32_1 = arith.constant 0 : i32
    return %c0_i32, %c0_i32_0 : i32, i32
  }
  func.func @transform_8(%arg0: i32, %arg1: i32) -> (i32, i32) {
    %c0_i32 = arith.constant 0 : i32
    %c0_i32_0 = arith.constant 0 : i32
    %c0_i32_1 = arith.constant 0 : i32
    return %c0_i32, %c0_i32_0 : i32, i32
  }
  func.func @transform_9(%arg0: i32, %arg1: i32) -> (i32, i32) {
    %c0_i32 = arith.constant 0 : i32
    %c0_i32_0 = arith.constant 0 : i32
    %c0_i32_1 = arith.constant 0 : i32
    return %c0_i32, %c0_i32_0 : i32, i32
  }
  func.func @transform_10(%arg0: i32, %arg1: i32) -> (i32, i32) {
    %c0_i32 = arith.constant 0 : i32
    %c0_i32_0 = arith.constant 0 : i32
    %c0_i32_1 = arith.constant 0 : i32
    return %c0_i32, %c0_i32_0 : i32, i32
  }
  func.func @transform_11(%arg0: i32, %arg1: i32) -> (i32, i32, i32, i32) {
    %c0_i32 = arith.constant 0 : i32
    %c0_i32_0 = arith.constant 0 : i32
    %c0_i32_1 = arith.constant 0 : i32
    return %arg0, %arg1, %c0_i32, %c0_i32_0 : i32, i32, i32, i32
  }
}

</mosaic_0001>

<bundles_post_ra>
// kernel: tpu_custom_call.1
= control target key start
LH: loop header
LB: loop body
LE: loop exit
PB: predicated region body
PF: predicated region fallthrough
CT: control target
= control target key end

     0   :  { %s4731_s0 = inlined_call_operand.vmem [shape: bf16[2,16,16,4], index: 0, kind: input, shape index: {}]   ;;  %s4732_s1 = inlined_call_operand.vmem [shape: bf16[2,16,16,4], index: 1, kind: input, shape index: {}]   ;;  %s4733_s2 = inlined_call_operand.vmem [shape: bf16[2,16,16,4], index: 2, kind: input, shape index: {}]   ;;  %s4734_s3 = inlined_call_operand.vmem [shape: bf16[4,4], index: 3, kind: input, shape index: {}]   ;;  %s4735_s4 = inlined_call_operand.vmem [shape: f32[1,4], index: 4, kind: input, shape index: {}]   ;;  %s4736_s5 = inlined_call_operand.vmem [shape: bf16[3,3,4,4], index: 5, kind: input, shape index: {}]   ;;  %s4737_s6 = inlined_call_operand.vmem [shape: f32[1,4], index: 6, kind: input, shape index: {}]   ;;  %s4738_s7 = inlined_call_operand.vmem [shape: bf16[4,16], index: 7, kind: input, shape index: {}]   ;;  %s4739_s8 = inlined_call_operand.vmem [shape: f32[1,16], index: 8, kind: input, shape index: {}]   ;;  %s4740_s9 = inlined_call_operand.vmem [shape: bf16[4,16], index: 9, kind: input, shape index: {}]   ;;  %s4741_s10 = inlined_call_operand.vmem [shape: f32[1,16], index: 10, kind: input, shape index: {}]   ;;  %s4742_s11 = inlined_call_operand.hbm [shape: f32[2,16,16,16], index: 11, kind: output, shape index: {}]  }
   0x1   :  { %4749 = sst [smem:[#allocation13_spill]] %s4731_s0 }
   0x2   :  { %4750 = sst [smem:[#allocation14_spill]] %s4734_s3 }
   0x3   :  { %16 = vsyncpa [#allocation4], 0 }
   0x4   :  { %18 = vsyncpa [#allocation4 + $0x1], 0  ;;  %s3711_s17 = smov 0   ;;  %s3713_s18 = smov 0  }
   0x5   :  { %s3715_s19 = smov 0   ;;  %s3717_s20 = smov 0  }
   0x6   :  { %s3719_s21 = smov 0   ;;  %s3721_s22 = smov 0  }
   0x7   :  { %s3723_s23 = smov 0   ;;  %s3725_s24 = smov 0  }
   0x8 LB: > { %4751 = sst [smem:[#allocation6_spill]] %s3626_s19  ;;  %s2916_s25 = sadd.s32 4294967295, %s3646_s24   ;;  %s3646_s24 = sphi %s3725_s24, %s24_s24   ;;  %s3642_s23 = sphi %s3723_s23, %s4772_s23   ;;  %s3638_s22 = sphi %s3721_s22, %s4771_s22   ;;  %s3634_s21 = sphi %s3719_s21, %s4770_s21   ;;  %s3630_s20 = sphi %s3717_s20, %s4769_s20   ;;  %s3626_s19 = sphi %s3715_s19, %s4768_s19   ;;  %s3622_s18 = sphi %s3713_s18, %s4774_s18   ;;  %s3618_s17 = sphi %s3711_s17, %s4773_s17  }
   0x9   : > { %4752 = sst [smem:[#allocation7_spill]] %s3638_s22  ;;  %s2917_s26 = sadd.s32 4294967294, %s3646_s24  }
   0xa   : > { %4753 = sst [smem:[#allocation8_spill]] %s3642_s23  ;;  %s33_s27 = sadd.s32 1, %s3638_s22 }
   0xb   : > { %p34_p0 = scmp.ge.s32.totalorder %s33_s27, 2  ;;  %s36_s28 = sadd.s32 1, %s3642_s23 }
   0xc   : > { %p323_p1 = scmp.ne.s32.totalorder %s3626_s19, %s3622_s18  ;;  %p324_p2 = scmp.eq.s32.totalorder %s2916_s25, 3 }
   0xd   : > { %s4776_s27 = smov (%p34_p0, %s33_s27), 0  ;;  %s4778_s28 = smov (!%p34_p0, %s36_s28), %s3642_s23 }
   0xe   : > { %4754 = sst [smem:[#allocation9_spill]] %s4776_s27  ;;  %s309_s29 = ssub.s32 %s3638_s22, %s4776_s27 }
   0xf   : > { %p3762_p3 = por %p324_p2, %p323_p1  ;;  %p38_p4 = scmp.ge.s32.totalorder %s4778_s28, 2 }
  0x10   : > { %p329_p5 = scmp.ne.s32.totalorder %s3622_s18, %s3618_s17  ;;  %p330_p6 = scmp.eq.s32.totalorder %s2917_s26, 3 }
  0x11   : > { %p2926_p7 = scmp.ge.s32.totalorder %s3646_s24, 1  ;;  %s4780_s28 = smov (%p38_p4, %s4778_s28), 0 }
  0x12   : > { %4756 = sst [smem:[#allocation10_spill]] %s4780_s28  ;;  %p3771_p8 = por %p330_p6, %p329_p5 }
  0x13   : > { %p426_p9 = scmp.lt.s32.totalorder %s3646_s24, 5  ;;  %s308_s13 = ssub.s32 %s3642_s23, %s4780_s28 }
  0x14   : > { %s4757_s12 = scalar_select %p3771_p8, 1, 0 }
  0x15   : > { %s313_s14 = sadd.s32 1, %s3626_s19  ;;  %s310_s15 = sor.u32 %s309_s29, %s308_s13 }
  0x16   : > { %4758 = sst [smem:[#allocation11_spill]] %s4757_s12  ;;  %p427_p10 = pnand %p2926_p7, %p426_p9 }
  0x17   : > { %p311_p11 = scmp.eq.s32.totalorder %s310_s15, 0  ;;  %s4760_s3 = sld [smem:[#allocation14_spill]] (!%p427_p10)  ;;  %vm653_vm0 = vcmask (!%p427_p10), 1041408   ;;  %v845_v2 = vld [vmem:[%s4736_s5] sm:$0x3] (!%p427_p10)  ;;  %vm622_vm1 = vcmask (!%p427_p10), 31744   ;;  %v874_v18 = vlaneseq (!%p427_p10) }
  0x18   : > { %430 = sbr.rel (%p427_p10) target bundleno = 919 (0x397), region = 64  ;;  %s2928_s26 = sshll.u32 (!%p427_p10), %s3630_s20, 3  ;;  %v975_v6 = vsel (!%p427_p10), %vm653_vm0, %v845_v2, 0  ;;  %v851_v14 = vld [vmem:[%s4736_s5 + $0xc] sm:$0x3] (!%p427_p10)  ;;  %vm2755_vm8 = vcmask (!%p427_p10), 130048  }
  0x19   : > { %s3780_s16 = scalar_select %p311_p11, %s3626_s19, %s313_s14  }
  0x1a   : > { %p498_p12 = scmp.lt.s32.totalorder (!%p427_p10), %s3634_s21, 1  ;;  %p500_p13 = scmp.lt.s32.totalorder (!%p427_p10), %s2928_s26, 15  ;;  %v848_v15 = vld [vmem:[%s4736_s5 + $0x6] sm:$0x3] (!%p427_p10)  ;;  %v846_v17 = vld [vmem:[%s4736_s5 + $0x2] sm:$0x3] (!%p427_p10) }
  0x1b   : > { %4759 = sst [smem:[#allocation12_spill]] %s3780_s16  ;;  %s2933_s29 = sadd.s32 (!%p427_p10), 4294967295, %s2928_s26  ;;  %3451 = vmatprep.subr.msk.bf16.mxu1 (!%p427_p10), %vm653_vm0, %v848_v15  ;;  %v1126_v16 = vsel (!%p427_p10), %vm653_vm0, %v848_v15, 0  ;;  %v3841_v19 = vld [vmem:[%s4735_s4] ss:$0 sm:$0xff] (!%p427_p10)  ;;  %v3844_v22 = vshrl.u32 (!%p427_p10), %v874_v18, 7 }
  0x1c   : > { %p510_p0 = scmp.gt.s32.totalorder (!%p427_p10), %s2933_s29, 0  ;;  %p2934_p1 = scmp.lt.s32.totalorder (!%p427_p10), %s2933_s29, 15  ;;  %3222 = vmatpush3.bf16.msra.mxu1 (!%p427_p10), %v1126_v16  ;;  %v1277_v35 = vsel (!%p427_p10), %vm653_vm0, %v851_v14, 0  ;;  %v3873_v39 = vsel (!%p427_p10), %vm653_vm0, %v846_v17, 0 }
  0x1d   : > { %v564_v0 = vld [vmem:[%s4760_s3] sm:$0x3] (!%p427_p10)  ;;  %s526_s23 = sadd.s32 (!%p427_p10), 8, %s2928_s26  ;;  %s4761_s0 = sld [smem:[#allocation13_spill]] (!%p427_p10)  ;;  %3453 = vmatprep.subr.msk.bf16.mxu1 (!%p427_p10), %vm653_vm0, %v846_v17  ;;  %vm876_vm3 = vcmp.lt.s32.totalorder (!%p427_p10), %v3844_v22, 1  ;;  %v3860_v33 = vadd.s32 (!%p427_p10), 8, %v3844_v22 }
  0x1e   : > { %3449 = vmatprep.subr.msk.bf16.mxu0 (!%p427_p10), %vm653_vm0, %v564_v0  ;;  %v655_v1 = vsel (!%p427_p10), %vm653_vm0, %v564_v0, 0  ;;  %p527_p2 = scmp.lt.s32.totalorder (!%p427_p10), %s526_s23, 15  ;;  %p790_p4 = scmp.eq.s32.totalorder (!%p427_p10), %s3630_s20, 0  ;;  %vm898_vm4 = vcmp.ge.s32.totalorder (!%p427_p10), %v3844_v22, 1  ;;  %vm1912_vm5 = vcmp.lt.s32.totalorder (!%p427_p10), %v3844_v22, 7 }
  0x1f   : > { %3182 = vmatpush3.bf16.msra.mxu0 %v655_v1  ;;  %s499_s15 = scalar_select %p498_p12, %s3634_s21, 1  ;;  %vm1934_vm6 = vcmp.lt.s32.totalorder %v3860_v33, 15  ;;  %v847_v22 = vld [vmem:[%s4736_s5 + $0x4] sm:$0x3] }
  0x20   : > { %s501_s27 = scalar_select %p500_p13, %s2928_s26, 15  ;;  %3450 = vmatprep.subr.msk.bf16.mxu0 %vm653_vm0, %v845_v2 }
  0x21   : > { %s2930_s25 = sshll.u32 %s499_s15, 5  ;;  %s4782_s29 = smov (!%p510_p0, %s2933_s29), 0 }
  0x22   : > { %s2929_s3 = sshll.u32 %s501_s27, 1  ;;  %s4784_s23 = smov (!%p527_p2, %s526_s23), 15 }
  0x23   : > { %s504_s28 = sadd.s32 %s2930_s25, %s2929_s3  ;;  %s4786_s29 = smov (!%p2934_p1, %s4782_s29), 15 }
  0x24   : > { %s2931_s22 = sshll.u32 %s504_s28, 2  ;;  %s4788_s23 = smov (!%p527_p2, %s4784_s23), 15 }
  0x25   : > { %s3797_s12 = scalar_lea.vmem %s4761_s0, %s2931_s22  ;;  %s2939_s13 = sshll.u32 %s4786_s29, 1 }
  0x26   : > { %s518_s14 = sadd.s32 %s2939_s13, %s2930_s25  ;;  %s2946_s15 = sshll.u32 %s4788_s23, 1  ;;  %v3535_v3 = vld [vmem:[%s3797_s12] sm:$0xff]   ;;  %v3536_v4 = vld [vmem:[%s3797_s12 + $0x8] sm:$0xff]   ;;  %v3537_v7 = vld [vmem:[%s3797_s12 + $0x10] sm:$0xff]  }
  0x27   : > { %s2941_s3 = sshll.u32 %s518_s14, 2  ;;  %s535_s28 = sadd.s32 %s2946_s15, %s2930_s25  ;;  %v3538_v8 = vld [vmem:[%s3797_s12 + $0x18] sm:$0xff]   ;;  %v3539_v9 = vld [vmem:[%s3797_s12 + $0x20] sm:$0xff]   ;;  %v3540_v10 = vld [vmem:[%s3797_s12 + $0x28] sm:$0xff]  }
  0x28   : > { %s520_s22 = scalar_lea.vmem %s4732_s1, %s2941_s3  ;;  %s2948_s16 = sshll.u32 %s535_s28, 2  ;;  %v3541_v11 = vld [vmem:[%s3797_s12 + $0x30] sm:$0xff]   ;;  %v3542_v12 = vld [vmem:[%s3797_s12 + $0x38] sm:$0xff]  }
  0x29   : > { %s537_s29 = scalar_lea.vmem %s4733_s2, %s2948_s16  ;;  %v3534_v5 = vld [vmem:[%s520_s22] sm:$0xff]   ;;  %p794_p5 = scmp.eq.s32.totalorder %s3630_s20, 1 }
  0x2a   : > { %3183 = vmatprep.mubr.msk.bf16.mxu0 %vm622_vm1, %v3534_v5  ;;  %v3543_v13 = vld [vmem:[%s537_s29] sm:$0xff]   ;;  %s791_s3 = scalar_select %p790_p4, 1, 0 }
  0x2b   : > { %3184 = vmatmul.mubr.msk.bf16.vlgmr.msra.gmra.mrb[0].mxu0 %vm622_vm1, %v3535_v3  ;;  %s3848_s19 = scalar_select %p794_p5, 1, 0 }
  0x2c   : > { %3187 = vmatprep.mubr.msk.bf16.mxu0 %vm622_vm1, %v3536_v4  ;;  %3204 = vmatpush3.bf16.msra.mxu0 %v975_v6  ;;  %v792_v21 = vstv %s791_s3  ;;  %s494_s25 = sand.u32 1, %s3622_s18   ;;  %s3070_s14 = sshll.u32 %s3630_s20, 4 }
  0x2d   : > { %3452 = vmatprep.subr.msk.bf16.mxu0 %vm653_vm0, %v851_v14  ;;  %vm3852_vm2 = vcmp.eq.s32.totalorder %v792_v21, 1  ;;  %v796_v38 = vstv %s3848_s19  ;;  %v3951_v21 = vld [vmem:[%s4736_s5 + $0x8] sm:$0x3]  ;;  %s2927_s13 = sshll.u32 %s494_s25, 7  ;;  %s3064_s15 = sshll.u32 %s3634_s21, 5 }
  0x2e   : > { %vm4057_vm7 = vcmp.eq.s32.totalorder %v796_v38, 1  ;;  %s2786_s3 = sadd.s32 %s3070_s14, %s3064_s15  ;;  %s4679_s22 = scalar_lea.sflag [#allocation4], %s494_s25 }
  0x2f   : > { %s3065_s20 = sshll.u32 %s2786_s3, 7  ;;  %s3648_s27 = smov [#allocation3]  }
  0x30   : > { %s4667_s19 = scalar_lea.hbm %s4742_s11, %s3065_s20  ;;  %s3556_s29 = sshll.u32 %s3648_s27, 4  ;;  %s3557_s29 = int_to_ptr.vmem [resolvable:$false] %s3556_s29 }
  0x31   : > { %s3558_s0 = scalar_lea.vmem %s3557_s29, 4096 }
  0x33   : > { %3188 = vmatmul.mubr.msk.bf16.gmra.mrb[4].mxu0 %vm622_vm1, %v3537_v7 }
  0x34   : > { %3191 = vmatprep.mubr.msk.bf16.mxu0 %vm622_vm1, %v3538_v8 }
  0x3b   : > { %3192 = vmatmul.mubr.msk.bf16.gmra.mrb[8].mxu0 %vm622_vm1, %v3539_v9 }
  0x3c   : > { %3195 = vmatprep.mubr.msk.bf16.mxu0 %vm622_vm1, %v3540_v10 }
  0x43   : > { %3196 = vmatmul.mubr.msk.bf16.gmra.mrb[12].mxu0 %vm622_vm1, %v3541_v11 }
  0x44   : > { %3199 = vmatprep.mubr.msk.bf16.mxu0 %vm622_vm1, %v3542_v12 }
  0x4b   : > { %3200 = vmatmul.mubr.msk.bf16.gmra.mrb[16].mxu0 %vm622_vm1, %v3543_v13 }
  0xfe   : > { %v3185_v20 = vpop.f32.mrb[0].mxu0 }
  0xff   : > { %v700_v23 = vadd.f32 %v3185_v20, %v3841_v19  ;;  %v691_v24 = vpop.f32.mrb[1].mxu0 }
 0x100   : > { %v692_v25 = vadd.f32 %v3841_v19, %v691_v24  ;;  %v3186_v26 = vpop.f32.mrb[2].mxu0 }
 0x101   : > { %v3850_v27 = vmax.f32 %v700_v23, 0.0  ;;  %v703_v29 = vadd.f32 %v3186_v26, %v3841_v19  ;;  %v694_v30 = vpop.f32.mrb[3].mxu0 }
 0x102   : > { %v770_v31 = vmax.f32 %v692_v25, 0.0  ;;  %v695_v32 = vadd.f32 %v3841_v19, %v694_v30 }
 0x103   : > { %v3862_v34 = vmax.f32 %v703_v29, 0.0  ;;  %v855_v40 = vrot.slane %v3850_v27, 7  ;;  %v1893_v41 = vrot.slane %v3850_v27, 1 }
 0x104   : > { %v3869_v36 = vsel %vm3852_vm2, 0.0, %v770_v31  ;;  %v771_v37 = vmax.f32 %v695_v32, 0.0 }
 0x105   : > { %v865_v42 = vrot.slane %v3862_v34, 7  ;;  %v3880_v43 = vpack.c.bf16 %v3862_v34, %v3850_v27  ;;  %v854_v44 = vrot.slane %v3869_v36, 7  ;;  %v1892_v45 = vrot.slane %v3869_v36, 1 }
 0x106   : > { %v1903_v46 = vrot.slane %v3862_v34, 1  ;;  %v3887_v47 = vsel %vm3852_vm2, 0.0, %v771_v37  ;;  %v3189_v48 = vpop.f32.mrb[4].mxu0 }
 0x107   : > { %v864_v49 = vrot.slane %v3887_v47, 7  ;;  %v1408_v50 = vpack.c.bf16 %v3887_v47, %v3869_v36  ;;  %v1902_v51 = vrot.slane %v3887_v47, 1  ;;  %v716_v52 = vadd.f32 %v3189_v48, %v3841_v19  ;;  %v707_v53 = vpop.f32.mrb[5].mxu0  ;;  %v850_v36 = vld [vmem:[%s4736_s5 + $0xa] sm:$0x3] }
 0x108   : > { %v708_v54 = vadd.f32 %v3841_v19, %v707_v53  ;;  %v3190_v55 = vpop.f32.mrb[6].mxu0  ;;  %v878_v56 = vsel %vm876_vm3, %v855_v40, %v865_v42  ;;  %v888_v57 = vsel %vm876_vm3, %v865_v42, %v855_v40  ;;  %v3906_v58 = vsel %vm1912_vm5, %v1893_v41, %v1903_v46 }
 0x109   : > { %v3908_v59 = vmax.f32 %v716_v52, 0.0  ;;  %v719_v60 = vadd.f32 %v3190_v55, %v3841_v19  ;;  %v710_v61 = vpop.f32.mrb[7].mxu0  ;;  %v906_v62 = vsel %vm898_vm4, %v888_v57, 0.0  ;;  %v877_v63 = vsel %vm876_vm3, %v854_v44, %v864_v49  ;;  %v3995_v57 = vld [vmem:[%s4736_s5 + $0xe] sm:$0x3] }
 0x10a   : > { %v3915_v0 = vmax.f32 %v708_v54, 0.0  ;;  %v711_v1 = vadd.f32 %v3841_v19, %v710_v61  ;;  %v925_v2 = vpack.c.bf16 %v878_v56, %v906_v62  ;;  %v887_v3 = vsel %vm876_vm3, %v864_v49, %v854_v44 }
 0x10b   : > { %v857_v4 = vrot.slane %v3908_v59, 7  ;;  %v1895_v5 = vrot.slane %v3908_v59, 1  ;;  %v3922_v6 = vmax.f32 %v719_v60, 0.0  ;;  %v904_v7 = vsel %vm898_vm4, %v887_v3, 0.0 }
 0x10c   : > { %v856_v8 = vrot.slane %v3915_v0, 7  ;;  %v1894_v9 = vrot.slane %v3915_v0, 1  ;;  %v3928_v10 = vmax.f32 %v711_v1, 0.0  ;;  %3223 = vmatprep.mubr.msk.bf16.mxu1 %vm622_vm1, %v925_v2  ;;  %v924_v11 = vpack.c.bf16 %v877_v63, %v904_v7 }
 0x10d   : > { %v867_v12 = vrot.slane %v3922_v6, 7  ;;  %v3934_v13 = vpack.c.bf16 %v3922_v6, %v3908_v59  ;;  %v1905_v14 = vrot.slane %v3922_v6, 1  ;;  %v3939_v15 = vsel %vm1912_vm5, %v1892_v45, %v1902_v51 }
 0x10e   : > { %v866_v16 = vrot.slane %v3928_v10, 7  ;;  %v3944_v17 = vpack.c.bf16 %v3928_v10, %v3915_v0  ;;  %v1904_v18 = vrot.slane %v3928_v10, 1  ;;  %3205 = vmatprep.mubr.msk.bf16.mxu0 %vm622_vm1, %v924_v11  ;;  %v3193_v20 = vpop.f32.mrb[8].mxu0  ;;  %v1923_v23 = vsel %vm1912_vm5, %v1902_v51, %v1892_v45 }
 0x10f   : > { %v732_v24 = vadd.f32 %v3193_v20, %v3841_v19  ;;  %3206 = vmatmul.mubr.msk.bf16.vlgmr.msra.gmra.mrb[20].mxu0 %vm622_vm1, %v925_v2  ;;  %v723_v25 = vpop.f32.mrb[9].mxu0  ;;  %v880_v26 = vsel %vm876_vm3, %v857_v4, %v867_v12  ;;  %v890_v28 = vsel %vm876_vm3, %v867_v12, %v857_v4  ;;  %v3963_v29 = vsel %vm1934_vm6, %v1923_v23, 0.0 }
 0x110   : > { %3240 = vmatpush3.bf16.msra.mxu0 %v1277_v35  ;;  %v724_v30 = vadd.f32 %v3841_v19, %v723_v25  ;;  %v3194_v31 = vpop.f32.mrb[10].mxu0  ;;  %v879_v32 = vsel %vm876_vm3, %v856_v8, %v866_v16  ;;  %v889_v37 = vsel %vm876_vm3, %v866_v16, %v856_v8  ;;  %v910_v40 = vsel %vm898_vm4, %v890_v28, 0.0 }
 0x111   : > { %v3972_v42 = vmax.f32 %v732_v24, 0.0  ;;  %v735_v44 = vadd.f32 %v3194_v31, %v3841_v19  ;;  %v726_v45 = vpop.f32.mrb[11].mxu0  ;;  %v908_v35 = vsel %vm898_vm4, %v889_v37, 0.0  ;;  %v3977_v48 = vpack.c.bf16 %v880_v26, %v910_v40  ;;  %3454 = vmatprep.subr.msk.bf16.mxu0 %vm653_vm0, %v3951_v21 }
 0x112   : > { %v3981_v49 = vmax.f32 %v724_v30, 0.0  ;;  %v727_v51 = vadd.f32 %v3841_v19, %v726_v45  ;;  %v3984_v52 = vpack.c.bf16 %v879_v32, %v908_v35  ;;  %v1959_v53 = vpack.c.bf16 %v3963_v29, %v3939_v15  ;;  %v2483_v15 = vld [vmem:[%s4738_s7] sm:$0x3] }
 0x113   : > { %v859_v54 = vrot.slane %v3972_v42, 7  ;;  %v1897_v55 = vrot.slane %v3972_v42, 1  ;;  %v3990_v56 = vmax.f32 %v735_v44, 0.0  ;;  %v1924_v60 = vsel %vm1912_vm5, %v1903_v46, %v1893_v41 }
 0x114   : > { %v858_v61 = vrot.slane %v3981_v49, 7  ;;  %v1896_v62 = vrot.slane %v3981_v49, 1  ;;  %v4005_v63 = vmax.f32 %v727_v51, 0.0  ;;  %3209 = vmatprep.mubr.msk.bf16.mxu0 %vm622_vm1, %v3984_v52  ;;  %3224 = vmatmul.mubr.msk.bf16.vlgmr.msra.gmra.mrb[0].mxu1 %vm622_vm1, %v3984_v52  ;;  %v1942_v27 = vsel %vm1934_vm6, %v1924_v60, 0.0 }
 0x115   : > { %v869_v34 = vrot.slane %v3990_v56, 7  ;;  %v4016_v41 = vpack.c.bf16 %v3990_v56, %v3972_v42  ;;  %v1907_v46 = vrot.slane %v3990_v56, 1  ;;  %3227 = vmatprep.mubr.msk.bf16.mxu1 %vm622_vm1, %v3977_v48  ;;  %3258 = vmatpush3.bf16.msra.mxu1 %v3873_v39  ;;  %v4023_v1 = vpack.c.bf16 %v1942_v27, %v3906_v58 }
 0x116   : > { %v868_v2 = vrot.slane %v4005_v63, 7  ;;  %v4028_v3 = vpack.c.bf16 %v4005_v63, %v3981_v49  ;;  %v1906_v4 = vrot.slane %v4005_v63, 1  ;;  %v3197_v7 = vpop.f32.mrb[12].mxu0  ;;  %3455 = vmatprep.subr.msk.bf16.mxu1 %vm653_vm0, %v3995_v57  ;;  %v1915_v39 = vsel %vm1912_vm5, %v1894_v9, %v1904_v18 }
 0x117   : > { %v748_v58 = vadd.f32 %v3197_v7, %v3841_v19  ;;  %3210 = vmatmul.mubr.msk.bf16.gmra.mrb[24].mxu0 %vm622_vm1, %v3977_v48  ;;  %v739_v8 = vpop.f32.mrb[13].mxu0  ;;  %v882_v10 = vsel %vm876_vm3, %v859_v54, %v869_v34  ;;  %v892_v11 = vsel %vm876_vm3, %v869_v34, %v859_v54  ;;  %v1925_v12 = vsel %vm1912_vm5, %v1904_v18, %v1894_v9 }
 0x118   : > { %v740_v16 = vadd.f32 %v3841_v19, %v739_v8  ;;  %v3198_v20 = vpop.f32.mrb[14].mxu0  ;;  %v881_v23 = vsel %vm876_vm3, %v858_v61, %v868_v2  ;;  %v891_v24 = vsel %vm876_vm3, %v868_v2, %v858_v61  ;;  %v914_v25 = vsel %vm898_vm4, %v892_v11, 0.0 }
 0x119   : > { %v4061_v0 = vmax.f32 %v748_v58, 0.0  ;;  %v751_v9 = vadd.f32 %v3198_v20, %v3841_v19  ;;  %v742_v18 = vpop.f32.mrb[15].mxu0  ;;  %v912_v28 = vsel %vm898_vm4, %v891_v24, 0.0  ;;  %v4066_v30 = vpack.c.bf16 %v882_v10, %v914_v25 }
 0x11a   : > { %v4068_v31 = vmax.f32 %v740_v16, 0.0  ;;  %v743_v32 = vadd.f32 %v3841_v19, %v742_v18  ;;  %v4071_v37 = vpack.c.bf16 %v881_v23, %v912_v28  ;;  %v1944_v38 = vsel %vm1934_vm6, %v1925_v12, 0.0 }
 0x11b   : > { %v861_v40 = vrot.slane %v4061_v0, 7  ;;  %v1899_v44 = vrot.slane %v4061_v0, 1  ;;  %v4077_v45 = vmax.f32 %v751_v9, 0.0  ;;  %v4079_v35 = vpack.c.bf16 %v1944_v38, %v1915_v39 }
 0x11c   : > { %v860_v51 = vrot.slane %v4068_v31, 7  ;;  %v1898_v54 = vrot.slane %v4068_v31, 1  ;;  %v4083_v60 = vmax.f32 %v743_v32, 0.0  ;;  %3213 = vmatprep.mubr.msk.bf16.mxu0 %vm622_vm1, %v4071_v37  ;;  %3228 = vmatmul.mubr.msk.bf16.gmra.mrb[4].mxu1 %vm622_vm1, %v4071_v37  ;;  %v1916_v61 = vsel %vm1912_vm5, %v1895_v5, %v1905_v14 }
 0x11d   : > { %v871_v27 = vrot.slane %v4077_v45, 7  ;;  %v4098_v34 = vpack.c.bf16 %v4077_v45, %v4061_v0  ;;  %v1909_v2 = vrot.slane %v4077_v45, 1  ;;  %3231 = vmatprep.mubr.msk.bf16.mxu1 %vm622_vm1, %v4066_v30  ;;  %v1926_v7 = vsel %vm1912_vm5, %v1905_v14, %v1895_v5 }
 0x11e   : > { %v870_v39 = vrot.slane %v4083_v60, 7  ;;  %v4112_v58 = vpack.c.bf16 %v4083_v60, %v4068_v31  ;;  %v1908_v8 = vrot.slane %v4083_v60, 1  ;;  %v3201_v10 = vpop.f32.mrb[16].mxu0  ;;  %v1946_v11 = vsel %vm1934_vm6, %v1926_v7, 0.0 }
 0x11f   : > { %v764_v12 = vadd.f32 %v3201_v10, %v3841_v19  ;;  %3214 = vmatmul.mubr.msk.bf16.gmra.mrb[28].mxu0 %vm622_vm1, %v4066_v30  ;;  %v755_v59 = vpop.f32.mrb[17].mxu0  ;;  %v884_v5 = vsel %vm876_vm3, %v861_v40, %v871_v27  ;;  %v894_v6 = vsel %vm876_vm3, %v871_v27, %v861_v40  ;;  %v4124_v14 = vpack.c.bf16 %v1946_v11, %v1916_v61 }
 0x120   : > { %v756_v16 = vadd.f32 %v3841_v19, %v755_v59  ;;  %v3202_v20 = vpop.f32.mrb[18].mxu0  ;;  %v883_v23 = vsel %vm876_vm3, %v860_v51, %v870_v39  ;;  %v893_v24 = vsel %vm876_vm3, %v870_v39, %v860_v51  ;;  %v918_v25 = vsel %vm898_vm4, %v894_v6, 0.0 }
 0x121   : > { %v788_v9 = vmax.f32 %v764_v12, 0.0  ;;  %v767_v18 = vadd.f32 %v3202_v20, %v3841_v19  ;;  %v758_v28 = vpop.f32.mrb[19].mxu0  ;;  %v916_v32 = vsel %vm898_vm4, %v893_v24, 0.0  ;;  %v4136_v38 = vpack.c.bf16 %v884_v5, %v918_v25 }
 0x122   : > { %v4138_v40 = vmax.f32 %v756_v16, 0.0  ;;  %v759_v61 = vadd.f32 %v3841_v19, %v758_v28  ;;  %v4141_v27 = vpack.c.bf16 %v883_v23, %v916_v32  ;;  %v1917_v51 = vsel %vm1912_vm5, %v1896_v62, %v1906_v4 }
 0x123   : > { %v4151_v7 = vsel %vm4057_vm7, 0.0, %v788_v9  ;;  %v789_v39 = vmax.f32 %v767_v18, 0.0  ;;  %v1927_v19 = vsel %vm1912_vm5, %v1906_v4, %v1896_v62  ;;  %v1918_v10 = vsel %vm1912_vm5, %v1897_v55, %v1907_v46 }
 0x124   : > { %v863_v11 = vrot.slane %v4151_v7, 7  ;;  %v1901_v12 = vrot.slane %v4151_v7, 1  ;;  %v862_v59 = vrot.slane %v4138_v40, 7  ;;  %v1900_v49 = vrot.slane %v4138_v40, 1  ;;  %3217 = vmatprep.mubr.msk.bf16.mxu0 %vm622_vm1, %v4141_v27  ;;  %3232 = vmatmul.mubr.msk.bf16.gmra.mrb[8].mxu1 %vm622_vm1, %v4141_v27 }
 0x125   : > { %v4175_v62 = vsel %vm4057_vm7, 0.0, %v789_v39  ;;  %v787_v63 = vmax.f32 %v759_v61, 0.0  ;;  %3235 = vmatprep.mubr.msk.bf16.mxu1 %vm622_vm1, %v4136_v38  ;;  %v1948_v4 = vsel %vm1934_vm6, %v1927_v19, 0.0  ;;  %v1928_v5 = vsel %vm1912_vm5, %v1907_v46, %v1897_v55  ;;  %v2970_v55 = vld [vmem:[%s4737_s6] ss:$0 sm:$0xff] }
 0x126   : > { %v873_v6 = vrot.slane %v4175_v62, 7  ;;  %v1417_v26 = vpack.c.bf16 %v4175_v62, %v4151_v7  ;;  %v1911_v16 = vrot.slane %v4175_v62, 1  ;;  %v4191_v20 = vpack.c.bf16 %v1948_v4, %v1917_v51  ;;  %831 = vst.msk [vmem:[#allocation2 + $0x10] sm:$0xff] %vm622_vm1, %v2970_v55  ;;  %829 = vst.msk [vmem:[#allocation2] sm:$0xff] %vm622_vm1, %v2970_v55 }
 0x127   : > { %v872_v23 = vrot.slane %v787_v63, 7  ;;  %v4194_v24 = vpack.c.bf16 %v787_v63, %v4138_v40  ;;  %v1910_v25 = vrot.slane %v787_v63, 1  ;;  %3218 = vmatmul.mubr.msk.bf16.gmra.mrb[32].mxu0 %vm622_vm1, %v4136_v38  ;;  %v1950_v42 = vsel %vm1934_vm6, %v1928_v5, 0.0  ;;  %830 = vst.msk [vmem:[#allocation2 + $0x8] sm:$0xff] %vm622_vm1, %v2970_v55  ;;  %832 = vst.msk [vmem:[#allocation2 + $0x18] sm:$0xff] %vm622_vm1, %v2970_v55 }
 0x128   : > { %3241 = vmatprep.mubr.msk.bf16.mxu0 %vm622_vm1, %v3984_v52  ;;  %v4207_v56 = vsel %vm876_vm3, %v863_v11, %v873_v6  ;;  %v896_v46 = vsel %vm876_vm3, %v873_v6, %v863_v11  ;;  %v4211_v9 = vpack.c.bf16 %v1950_v42, %v1918_v10  ;;  %v1919_v18 = vsel %vm1912_vm5, %v1898_v54, %v1908_v8 }
 0x129   : > { %833 = vst.msk [vmem:[#allocation2 + $0x20] sm:$0xff] %vm622_vm1, %v2970_v55  ;;  %834 = vst.msk [vmem:[#allocation2 + $0x28] sm:$0xff] %vm622_vm1, %v2970_v55  ;;  %v885_v52 = vsel %vm876_vm3, %v862_v59, %v872_v23  ;;  %v895_v28 = vsel %vm876_vm3, %v872_v23, %v862_v59  ;;  %v922_v32 = vsel %vm898_vm4, %v896_v46, 0.0  ;;  %v1929_v40 = vsel %vm1912_vm5, %v1908_v8, %v1898_v54 }
 0x12a   : > { %835 = vst.msk [vmem:[#allocation2 + $0x30] sm:$0xff] %vm622_vm1, %v2970_v55  ;;  %836 = vst.msk [vmem:[#allocation2 + $0x38] sm:$0xff] %vm622_vm1, %v2970_v55  ;;  %v920_v61 = vsel %vm898_vm4, %v895_v28, 0.0  ;;  %v933_v51 = vpack.c.bf16 %v4207_v56, %v922_v32  ;;  %v1952_v39 = vsel %vm1934_vm6, %v1929_v40, 0.0  ;;  %v1920_v31 = vsel %vm1912_vm5, %v1899_v44, %v1909_v2 }
 0x12b   : > { %837 = vst.msk [vmem:[#allocation2 + $0x40] sm:$0xff] %vm622_vm1, %v2970_v55  ;;  %838 = vst.msk [vmem:[#allocation2 + $0x48] sm:$0xff] %vm622_vm1, %v2970_v55  ;;  %v932_v19 = vpack.c.bf16 %v885_v52, %v920_v61  ;;  %v4258_v60 = vpack.c.bf16 %v1952_v39, %v1919_v18  ;;  %v1930_v54 = vsel %vm1912_vm5, %v1909_v2, %v1899_v44  ;;  %v1610_v44 = vsel %vm653_vm0, %v3951_v21, 0 }
 0x12c   : > { %839 = vst.msk [vmem:[#allocation2 + $0x50] sm:$0xff] %vm622_vm1, %v2970_v55  ;;  %840 = vst.msk [vmem:[#allocation2 + $0x58] sm:$0xff] %vm622_vm1, %v2970_v55  ;;  %v1921_v8 = vsel %vm1912_vm5, %v1900_v49, %v1910_v25  ;;  %v1954_v10 = vsel %vm1934_vm6, %v1930_v54, 0.0  ;;  %v1931_v11 = vsel %vm1912_vm5, %v1910_v25, %v1900_v49  ;;  %v4274_v59 = vsel %vm1912_vm5, %v1901_v12, %v1911_v16 }
 0x12d   : > { %841 = vst.msk [vmem:[#allocation2 + $0x60] sm:$0xff] %vm622_vm1, %v2970_v55  ;;  %842 = vst.msk [vmem:[#allocation2 + $0x68] sm:$0xff] %vm622_vm1, %v2970_v55  ;;  %v1932_v0 = vsel %vm1912_vm5, %v1911_v16, %v1901_v12  ;;  %3236 = vmatmul.mubr.msk.bf16.gmra.mrb[12].mxu1 %vm622_vm1, %v932_v19  ;;  %v4281_v45 = vpack.c.bf16 %v1954_v10, %v1920_v31  ;;  %v1956_v2 = vsel %vm1934_vm6, %v1931_v11, 0.0  ;;  %v1761_v33 = vsel %vm653_vm0, %v3995_v57, 0  ;;  %v936_v29 = vld [vmem:[#allocation2 + $0x10] sm:$0xff] }
 0x12e   : > { %843 = vst.msk [vmem:[#allocation2 + $0x70] sm:$0xff] %vm622_vm1, %v2970_v55  ;;  %844 = vst.msk [vmem:[#allocation2 + $0x78] sm:$0xff] %vm622_vm1, %v2970_v55  ;;  %v4287_v49 = vsel %vm1934_vm6, %v1932_v0, 0.0  ;;  %3259 = vmatprep.mubr.msk.bf16.mxu1 %vm622_vm1, %v1408_v50  ;;  %v4296_v12 = vpack.c.bf16 %v1956_v2, %v1921_v8  ;;  %v2010_v47 = vsel %vm653_vm0, %v847_v22, 0  ;;  %v853_v50 = vld [vmem:[%s4736_s5 + $0x10] sm:$0x3] }
 0x12f   : > { %v1968_v21 = vpack.c.bf16 %v4287_v49, %v4274_v59  ;;  %3242 = vmatmul.mubr.msk.bf16.vlgmr.msra.gmra.mrb[36].mxu0 %vm622_vm1, %v3977_v48  ;;  %v934_v48 = vld [vmem:[#allocation2] sm:$0xff]  ;;  %v937_v57 = vld [vmem:[#allocation2 + $0x18] sm:$0xff] }
 0x130   : > { %3276 = vmatpush3.bf16.msra.mxu0 %v1610_v44  ;;  %3245 = vmatprep.mubr.msk.bf16.mxu0 %vm622_vm1, %v4071_v37  ;;  %v938_v62 = vld [vmem:[#allocation2 + $0x20] sm:$0xff]  ;;  %v939_v16 = vld [vmem:[#allocation2 + $0x28] sm:$0xff] }
 0x131   : > { %3456 = vmatprep.subr.msk.bf16.mxu0 %vm653_vm0, %v847_v22  ;;  %v941_v5 = vld [vmem:[#allocation2 + $0x38] sm:$0xff] }
 0x132   : > { %v942_v31 = vld [vmem:[#allocation2 + $0x40] sm:$0xff]  ;;  %v943_v11 = vld [vmem:[#allocation2 + $0x48] sm:$0xff] }
 0x133   : > { %v945_v54 = vld [vmem:[#allocation2 + $0x58] sm:$0xff] }
 0x135   : > { %3260 = vmatmul.mubr.msk.bf16.vlgmr.msra.gmra.mrb[16].mxu1 %vm622_vm1, %v3880_v43 }
 0x136   : > { %3263 = vmatprep.mubr.msk.bf16.mxu1 %vm622_vm1, %v3944_v17  ;;  %3294 = vmatpush3.bf16.msra.mxu1 %v1761_v33 }
 0x137   : > { %3246 = vmatmul.mubr.msk.bf16.gmra.mrb[40].mxu0 %vm622_vm1, %v4066_v30  ;;  %3457 = vmatprep.subr.msk.bf16.mxu1 %vm653_vm0, %v850_v36 }
 0x138   : > { %3249 = vmatprep.mubr.msk.bf16.mxu0 %vm622_vm1, %v4141_v27  ;;  %v940_v27 = vld [vmem:[#allocation2 + $0x30] sm:$0xff] }
 0x13d   : > { %3264 = vmatmul.mubr.msk.bf16.gmra.mrb[20].mxu1 %vm622_vm1, %v3934_v13 }
 0x13e   : > { %3267 = vmatprep.mubr.msk.bf16.mxu1 %vm622_vm1, %v4028_v3 }
 0x13f   : > { %3250 = vmatmul.mubr.msk.bf16.gmra.mrb[44].mxu0 %vm622_vm1, %v4136_v38 }
 0x140   : > { %3253 = vmatprep.mubr.msk.bf16.mxu0 %vm622_vm1, %v932_v19 }
 0x145   : > { %3268 = vmatmul.mubr.msk.bf16.gmra.mrb[24].mxu1 %vm622_vm1, %v4016_v41 }
 0x146   : > { %3271 = vmatprep.mubr.msk.bf16.mxu1 %vm622_vm1, %v4112_v58 }
 0x147   : > { %3254 = vmatmul.mubr.msk.bf16.gmra.mrb[48].mxu0 %vm622_vm1, %v933_v51  ;;  %v944_v51 = vld [vmem:[#allocation2 + $0x50] sm:$0xff] }
 0x148   : > { %3277 = vmatprep.mubr.msk.bf16.mxu0 %vm622_vm1, %v3880_v43  ;;  %v2161_v43 = vsel %vm653_vm0, %v850_v36, 0 }
 0x14d   : > { %3272 = vmatmul.mubr.msk.bf16.gmra.mrb[28].mxu1 %vm622_vm1, %v4098_v34 }
 0x14e   : > { %3295 = vmatprep.mubr.msk.bf16.mxu1 %vm622_vm1, %v3944_v17 }
 0x14f   : > { %3278 = vmatmul.mubr.msk.bf16.vlgmr.msra.gmra.mrb[52].mxu0 %vm622_vm1, %v3944_v17  ;;  %v2516_v17 = vsel %vm653_vm0, %v2483_v15, 0 }
 0x150   : > { %3312 = vmatpush3.bf16.msra.mxu0 %v2010_v47  ;;  %3281 = vmatprep.mubr.msk.bf16.mxu0 %vm622_vm1, %v3934_v13 }
 0x151   : > { %3458 = vmatprep.subr.msk.bf16.mxu0 %vm653_vm0, %v853_v50 }
 0x155   : > { %3296 = vmatmul.mubr.msk.bf16.vlgmr.msra.gmra.mrb[32].mxu1 %vm622_vm1, %v3934_v13  ;;  %v2312_v13 = vsel %vm653_vm0, %v853_v50, 0 }
 0x156   : > { %3299 = vmatprep.mubr.msk.bf16.mxu1 %vm622_vm1, %v4028_v3  ;;  %3330 = vmatpush3.bf16.msra.mxu1 %v2161_v43  ;;  %v4450_v43 = vld [vmem:[%s4740_s9] sm:$0x3] }
 0x157   : > { %3282 = vmatmul.mubr.msk.bf16.gmra.mrb[56].mxu0 %vm622_vm1, %v4028_v3  ;;  %3459 = vmatprep.subr.msk.bf16.mxu1 %vm653_vm0, %v2483_v15  ;;  %v935_v3 = vld [vmem:[#allocation2 + $0x8] sm:$0xff] }
 0x158   : > { %3285 = vmatprep.mubr.msk.bf16.mxu0 %vm622_vm1, %v4016_v41 }
 0x15d   : > { %3300 = vmatmul.mubr.msk.bf16.gmra.mrb[36].mxu1 %vm622_vm1, %v4016_v41 }
 0x15e   : > { %3303 = vmatprep.mubr.msk.bf16.mxu1 %vm622_vm1, %v4112_v58 }
 0x15f   : > { %3286 = vmatmul.mubr.msk.bf16.gmra.mrb[60].mxu0 %vm622_vm1, %v4112_v58 }
 0x160   : > { %3289 = vmatprep.mubr.msk.bf16.mxu0 %vm622_vm1, %v4098_v34 }
 0x165   : > { %3304 = vmatmul.mubr.msk.bf16.gmra.mrb[40].mxu1 %vm622_vm1, %v4098_v34 }
 0x166   : > { %3307 = vmatprep.mubr.msk.bf16.mxu1 %vm622_vm1, %v4194_v24 }
 0x167   : > { %3290 = vmatmul.mubr.msk.bf16.gmra.mrb[64].mxu0 %vm622_vm1, %v4194_v24 }
 0x168   : > { %3313 = vmatprep.mubr.msk.bf16.mxu0 %vm622_vm1, %v1959_v53 }
 0x16d   : > { %3308 = vmatmul.mubr.msk.bf16.gmra.mrb[44].mxu1 %vm622_vm1, %v1417_v26 }
 0x16e   : > { %3331 = vmatprep.mubr.msk.bf16.mxu1 %vm622_vm1, %v4023_v1 }
 0x16f   : > { %3314 = vmatmul.mubr.msk.bf16.vlgmr.msra.gmra.mrb[68].mxu0 %vm622_vm1, %v4023_v1 }
 0x170   : > { %3348 = vmatpush3.bf16.msra.mxu0 %v2312_v13  ;;  %3317 = vmatprep.mubr.msk.bf16.mxu0 %vm622_vm1, %v4079_v35 }
 0x175   : > { %3332 = vmatmul.mubr.msk.bf16.vlgmr.msra.gmra.mrb[48].mxu1 %vm622_vm1, %v4079_v35 }
 0x176   : > { %3335 = vmatprep.mubr.msk.bf16.mxu1 %vm622_vm1, %v4124_v14  ;;  %3366 = vmatpush3.bf16.msra.mxu1 %v2516_v17  ;;  %v948_v17 = vld [vmem:[#allocation2 + $0x70] sm:$0xff] }
 0x177   : > { %3318 = vmatmul.mubr.msk.bf16.gmra.mrb[72].mxu0 %vm622_vm1, %v4124_v14  ;;  %3460 = vmatprep.subr.msk.bf16.mxu1 %vm653_vm0, %v4450_v43 }
 0x178   : > { %3321 = vmatprep.mubr.msk.bf16.mxu0 %vm622_vm1, %v4191_v20 }
 0x17d   : > { %3336 = vmatmul.mubr.msk.bf16.gmra.mrb[52].mxu1 %vm622_vm1, %v4191_v20 }
 0x17e   : > { %3339 = vmatprep.mubr.msk.bf16.mxu1 %vm622_vm1, %v4211_v9 }
 0x17f   : > { %3322 = vmatmul.mubr.msk.bf16.gmra.mrb[76].mxu0 %vm622_vm1, %v4211_v9 }
 0x180   : > { %3325 = vmatprep.mubr.msk.bf16.mxu0 %vm622_vm1, %v4258_v60 }
 0x185   : > { %3340 = vmatmul.mubr.msk.bf16.gmra.mrb[56].mxu1 %vm622_vm1, %v4258_v60 }
 0x186   : > { %3343 = vmatprep.mubr.msk.bf16.mxu1 %vm622_vm1, %v4281_v45 }
 0x187   : > { %3326 = vmatmul.mubr.msk.bf16.gmra.mrb[80].mxu0 %vm622_vm1, %v4281_v45 }
 0x188   : > { %3349 = vmatprep.mubr.msk.bf16.mxu0 %vm622_vm1, %v4079_v35 }
 0x18d   : > { %3344 = vmatmul.mubr.msk.bf16.gmra.mrb[60].mxu1 %vm622_vm1, %v4296_v12 }
 0x18f   : > { %3350 = vmatmul.mubr.msk.bf16.vlgmr.msra.gmra.mrb[84].mxu0 %vm622_vm1, %v4124_v14 }
 0x190   : > { %3353 = vmatprep.mubr.msk.bf16.mxu0 %vm622_vm1, %v4191_v20 }
 0x197   : > { %3354 = vmatmul.mubr.msk.bf16.gmra.mrb[88].mxu0 %vm622_vm1, %v4211_v9 }
 0x198   : > { %3357 = vmatprep.mubr.msk.bf16.mxu0 %vm622_vm1, %v4258_v60 }
 0x19f   : > { %3358 = vmatmul.mubr.msk.bf16.gmra.mrb[92].mxu0 %vm622_vm1, %v4281_v45 }
 0x1a0   : > { %3361 = vmatprep.mubr.msk.bf16.mxu0 %vm622_vm1, %v4296_v12 }
 0x1a7   : > { %3362 = vmatmul.mubr.msk.bf16.gmra.mrb[96].mxu0 %vm622_vm1, %v1968_v21 }
 0x1e2   : > { %v3207_v53 = vpop.f32.mrb[20].mxu0 }
 0x1e3   : > { %v1076_v41 = vadd.f32 %v3207_v53, %v936_v29  ;;  %v1011_v1 = vpop.f32.mrb[21].mxu0 }
 0x1e4   : > { %v1074_v30 = vadd.f32 %v1011_v1, %v934_v48  ;;  %v3208_v37 = vpop.f32.mrb[22].mxu0  ;;  %v946_v48 = vld [vmem:[#allocation2 + $0x60] sm:$0xff] }
 0x1e5   : > { %1092 = vst.msk [vmem:[#allocation2 + $0x10] sm:$0xff] %vm622_vm1, %v1076_v41  ;;  %v1077_v35 = vadd.f32 %v3208_v37, %v937_v57  ;;  %v1014_v34 = vpop.f32.mrb[23].mxu0  ;;  %v949_v41 = vld [vmem:[#allocation2 + $0x78] sm:$0xff] }
 0x1e6   : > { %1090 = vst.msk [vmem:[#allocation2] sm:$0xff] %vm622_vm1, %v1074_v30  ;;  %v1075_v58 = vadd.f32 %v1014_v34, %v935_v3  ;;  %v947_v30 = vld [vmem:[#allocation2 + $0x68] sm:$0xff] }
 0x1e7   : > { %1093 = vst.msk [vmem:[#allocation2 + $0x18] sm:$0xff] %vm622_vm1, %v1077_v35  ;;  %v3225_v14 = vpop.f32.mrb[0].mxu1 }
 0x1e8   : > { %1091 = vst.msk [vmem:[#allocation2 + $0x8] sm:$0xff] %vm622_vm1, %v1075_v58  ;;  %v1162_v38 = vpop.f32.mrb[1].mxu1 }
 0x1e9   : > { %v3226_v7 = vpop.f32.mrb[2].mxu1 }
 0x1ea   : > { %v3211_v63 = vpop.f32.mrb[24].mxu0  ;;  %v1165_v4 = vpop.f32.mrb[3].mxu1 }
 0x1eb   : > { %v1080_v6 = vadd.f32 %v3211_v63, %v940_v27  ;;  %v1027_v26 = vpop.f32.mrb[25].mxu0 }
 0x1ec   : > { %v1108_v20 = vld [vmem:[#allocation2 + $0x10] sm:$0xff]  ;;  %v1078_v23 = vadd.f32 %v1027_v26, %v938_v62  ;;  %v3212_v24 = vpop.f32.mrb[26].mxu0 }
 0x1ed   : > { %v1227_v25 = vadd.f32 %v3225_v14, %v1108_v20  ;;  %v1106_v42 = vld [vmem:[#allocation2] sm:$0xff]  ;;  %1096 = vst.msk [vmem:[#allocation2 + $0x30] sm:$0xff] %vm622_vm1, %v1080_v6  ;;  %v1081_v55 = vadd.f32 %v3212_v24, %v941_v5  ;;  %v1030_v56 = vpop.f32.mrb[27].mxu0 }
 0x1ee   : > { %v1225_v46 = vadd.f32 %v1162_v38, %v1106_v42  ;;  %v1109_v9 = vld [vmem:[#allocation2 + $0x18] sm:$0xff]  ;;  %1094 = vst.msk [vmem:[#allocation2 + $0x20] sm:$0xff] %vm622_vm1, %v1078_v23  ;;  %v1079_v18 = vadd.f32 %v1030_v56, %v939_v16 }
 0x1ef   : > { %1243 = vst.msk [vmem:[#allocation2 + $0x10] sm:$0xff] %vm622_vm1, %v1227_v25  ;;  %v1228_v52 = vadd.f32 %v3226_v7, %v1109_v9  ;;  %v1107_v28 = vld [vmem:[#allocation2 + $0x8] sm:$0xff]  ;;  %1097 = vst.msk [vmem:[#allocation2 + $0x38] sm:$0xff] %vm622_vm1, %v1081_v55  ;;  %v3229_v32 = vpop.f32.mrb[4].mxu1 }
 0x1f0   : > { %1241 = vst.msk [vmem:[#allocation2] sm:$0xff] %vm622_vm1, %v1225_v46  ;;  %v1226_v40 = vadd.f32 %v1165_v4, %v1107_v28  ;;  %1095 = vst.msk [vmem:[#allocation2 + $0x28] sm:$0xff] %vm622_vm1, %v1079_v18  ;;  %v1178_v61 = vpop.f32.mrb[5].mxu1 }
 0x1f1   : > { %1244 = vst.msk [vmem:[#allocation2 + $0x18] sm:$0xff] %vm622_vm1, %v1228_v52  ;;  %v3230_v39 = vpop.f32.mrb[6].mxu1 }
 0x1f2   : > { %1242 = vst.msk [vmem:[#allocation2 + $0x8] sm:$0xff] %vm622_vm1, %v1226_v40  ;;  %v3215_v19 = vpop.f32.mrb[28].mxu0  ;;  %v1181_v60 = vpop.f32.mrb[7].mxu1 }
 0x1f3   : > { %v1084_v8 = vadd.f32 %v3215_v19, %v944_v51  ;;  %v1043_v10 = vpop.f32.mrb[29].mxu0 }
 0x1f4   : > { %v1112_v59 = vld [vmem:[#allocation2 + $0x30] sm:$0xff]  ;;  %v1082_v0 = vadd.f32 %v1043_v10, %v942_v31  ;;  %v3216_v44 = vpop.f32.mrb[30].mxu0 }
 0x1f5   : > { %v1231_v45 = vadd.f32 %v3229_v32, %v1112_v59  ;;  %v1110_v2 = vld [vmem:[#allocation2 + $0x20] sm:$0xff]  ;;  %1100 = vst.msk [vmem:[#allocation2 + $0x50] sm:$0xff] %vm622_vm1, %v1084_v8  ;;  %v1085_v49 = vadd.f32 %v3216_v44, %v945_v54  ;;  %v1046_v22 = vpop.f32.mrb[31].mxu0 }
 0x1f6   : > { %v1229_v12 = vadd.f32 %v1178_v61, %v1110_v2  ;;  %v1113_v21 = vld [vmem:[#allocation2 + $0x38] sm:$0xff]  ;;  %1098 = vst.msk [vmem:[#allocation2 + $0x40] sm:$0xff] %vm622_vm1, %v1082_v0  ;;  %v1083_v33 = vadd.f32 %v1046_v22, %v943_v11  ;;  %v1259_v20 = vld [vmem:[#allocation2 + $0x10] sm:$0xff] }
 0x1f7   : > { %1247 = vst.msk [vmem:[#allocation2 + $0x30] sm:$0xff] %vm622_vm1, %v1231_v45  ;;  %v1232_v36 = vadd.f32 %v3230_v39, %v1113_v21  ;;  %v1111_v47 = vld [vmem:[#allocation2 + $0x28] sm:$0xff]  ;;  %1101 = vst.msk [vmem:[#allocation2 + $0x58] sm:$0xff] %vm622_vm1, %v1085_v49  ;;  %v3233_v50 = vpop.f32.mrb[8].mxu1  ;;  %v1257_v42 = vld [vmem:[#allocation2] sm:$0xff] }
 0x1f8   : > { %1245 = vst.msk [vmem:[#allocation2 + $0x20] sm:$0xff] %vm622_vm1, %v1229_v12  ;;  %v1230_v13 = vadd.f32 %v1181_v60, %v1111_v47  ;;  %1099 = vst.msk [vmem:[#allocation2 + $0x48] sm:$0xff] %vm622_vm1, %v1083_v33  ;;  %v1194_v15 = vpop.f32.mrb[9].mxu1  ;;  %v1260_v18 = vld [vmem:[#allocation2 + $0x18] sm:$0xff] }
 0x1f9   : > { %1248 = vst.msk [vmem:[#allocation2 + $0x38] sm:$0xff] %vm622_vm1, %v1232_v36  ;;  %v3234_v29 = vpop.f32.mrb[10].mxu1  ;;  %v1258_v61 = vld [vmem:[#allocation2 + $0x8] sm:$0xff] }
 0x1fa   : > { %1246 = vst.msk [vmem:[#allocation2 + $0x28] sm:$0xff] %vm622_vm1, %v1230_v13  ;;  %v3219_v53 = vpop.f32.mrb[32].mxu0  ;;  %v1197_v57 = vpop.f32.mrb[11].mxu1 }
 0x1fb   : > { %v1088_v1 = vadd.f32 %v3219_v53, %v948_v17  ;;  %v1059_v3 = vpop.f32.mrb[33].mxu0 }
 0x1fc   : > { %v1116_v37 = vld [vmem:[#allocation2 + $0x50] sm:$0xff]  ;;  %v1086_v35 = vadd.f32 %v1059_v3, %v946_v48  ;;  %v3220_v34 = vpop.f32.mrb[34].mxu0 }
 0x1fd   : > { %v1235_v58 = vadd.f32 %v3233_v50, %v1116_v37  ;;  %v1114_v14 = vld [vmem:[#allocation2 + $0x40] sm:$0xff]  ;;  %1104 = vst.msk [vmem:[#allocation2 + $0x70] sm:$0xff] %vm622_vm1, %v1088_v1  ;;  %v1089_v38 = vadd.f32 %v3220_v34, %v949_v41  ;;  %v1062_v27 = vpop.f32.mrb[35].mxu0 }
 0x1fe   : > { %v1233_v7 = vadd.f32 %v1194_v15, %v1114_v14  ;;  %v1117_v62 = vld [vmem:[#allocation2 + $0x58] sm:$0xff]  ;;  %1102 = vst.msk [vmem:[#allocation2 + $0x60] sm:$0xff] %vm622_vm1, %v1086_v35  ;;  %v1087_v63 = vadd.f32 %v1062_v27, %v947_v30  ;;  %v1263_v59 = vld [vmem:[#allocation2 + $0x30] sm:$0xff] }
 0x1ff   : > { %1251 = vst.msk [vmem:[#allocation2 + $0x50] sm:$0xff] %vm622_vm1, %v1235_v58  ;;  %v1236_v4 = vadd.f32 %v3234_v29, %v1117_v62  ;;  %v1115_v5 = vld [vmem:[#allocation2 + $0x48] sm:$0xff]  ;;  %1105 = vst.msk [vmem:[#allocation2 + $0x78] sm:$0xff] %vm622_vm1, %v1089_v38  ;;  %v1261_v2 = vld [vmem:[#allocation2 + $0x20] sm:$0xff] }
 0x200   : > { %1249 = vst.msk [vmem:[#allocation2 + $0x40] sm:$0xff] %vm622_vm1, %v1233_v7  ;;  %v1234_v6 = vadd.f32 %v1197_v57, %v1115_v5  ;;  %1103 = vst.msk [vmem:[#allocation2 + $0x68] sm:$0xff] %vm622_vm1, %v1087_v63  ;;  %v3237_v26 = vpop.f32.mrb[12].mxu1  ;;  %v1264_v33 = vld [vmem:[#allocation2 + $0x38] sm:$0xff] }
 0x201   : > { %1252 = vst.msk [vmem:[#allocation2 + $0x58] sm:$0xff] %vm622_vm1, %v1236_v4  ;;  %v1210_v16 = vpop.f32.mrb[13].mxu1  ;;  %v1262_v15 = vld [vmem:[#allocation2 + $0x28] sm:$0xff] }
 0x202   : > { %1250 = vst.msk [vmem:[#allocation2 + $0x48] sm:$0xff] %vm622_vm1, %v1234_v6  ;;  %v3243_v23 = vpop.f32.mrb[36].mxu0  ;;  %v3238_v24 = vpop.f32.mrb[14].mxu1 }
 0x203   : > { %v1378_v25 = vadd.f32 %v3243_v23, %v1259_v20  ;;  %v1313_v55 = vpop.f32.mrb[37].mxu0  ;;  %v1213_v56 = vpop.f32.mrb[15].mxu1 }
 0x204   : > { %v1376_v46 = vadd.f32 %v1313_v55, %v1257_v42  ;;  %v1120_v9 = vld [vmem:[#allocation2 + $0x70] sm:$0xff]  ;;  %v3244_v52 = vpop.f32.mrb[38].mxu0 }
 0x205   : > { %1394 = vst.msk [vmem:[#allocation2 + $0x10] sm:$0xff] %vm622_vm1, %v1378_v25  ;;  %v1239_v28 = vadd.f32 %v3237_v26, %v1120_v9  ;;  %v1379_v32 = vadd.f32 %v3244_v52, %v1260_v18  ;;  %v1118_v40 = vld [vmem:[#allocation2 + $0x60] sm:$0xff]  ;;  %v1316_v51 = vpop.f32.mrb[39].mxu0 }
 0x206   : > { %1392 = vst.msk [vmem:[#allocation2] sm:$0xff] %vm622_vm1, %v1376_v46  ;;  %v1237_v39 = vadd.f32 %v1210_v16, %v1118_v40  ;;  %v1377_v31 = vadd.f32 %v1316_v51, %v1258_v61  ;;  %v1121_v19 = vld [vmem:[#allocation2 + $0x78] sm:$0xff]  ;;  %v1267_v37 = vld [vmem:[#allocation2 + $0x50] sm:$0xff] }
 0x207   : > { %1255 = vst.msk [vmem:[#allocation2 + $0x70] sm:$0xff] %vm622_vm1, %v1239_v28  ;;  %1395 = vst.msk [vmem:[#allocation2 + $0x18] sm:$0xff] %vm622_vm1, %v1379_v32  ;;  %v1240_v60 = vadd.f32 %v3238_v24, %v1121_v19  ;;  %v1119_v54 = vld [vmem:[#allocation2 + $0x68] sm:$0xff]  ;;  %v1265_v14 = vld [vmem:[#allocation2 + $0x40] sm:$0xff] }
 0x208   : > { %1253 = vst.msk [vmem:[#allocation2 + $0x60] sm:$0xff] %vm622_vm1, %v1237_v39  ;;  %1393 = vst.msk [vmem:[#allocation2 + $0x8] sm:$0xff] %vm622_vm1, %v1377_v31  ;;  %v1238_v8 = vadd.f32 %v1213_v56, %v1119_v54  ;;  %v3261_v10 = vpop.f32.mrb[16].mxu1  ;;  %v1268_v63 = vld [vmem:[#allocation2 + $0x58] sm:$0xff] }
 0x209   : > { %1256 = vst.msk [vmem:[#allocation2 + $0x78] sm:$0xff] %vm622_vm1, %v1240_v60  ;;  %v1495_v11 = vpop.f32.mrb[17].mxu1  ;;  %v1266_v16 = vld [vmem:[#allocation2 + $0x48] sm:$0xff] }
 0x20a   : > { %1254 = vst.msk [vmem:[#allocation2 + $0x68] sm:$0xff] %vm622_vm1, %v1238_v8  ;;  %v3247_v0 = vpop.f32.mrb[40].mxu0  ;;  %v3262_v44 = vpop.f32.mrb[18].mxu1 }
 0x20b   : > { %v1382_v45 = vadd.f32 %v3247_v0, %v1263_v59  ;;  %v1329_v49 = vpop.f32.mrb[41].mxu0  ;;  %v1498_v22 = vpop.f32.mrb[19].mxu1 }
 0x20c   : > { %v1420_v12 = vld [vmem:[#allocation2 + $0x10] sm:$0xff]  ;;  %v1380_v21 = vadd.f32 %v1329_v49, %v1261_v2  ;;  %v3248_v36 = vpop.f32.mrb[42].mxu0 }
 0x20d   : > { %v1560_v47 = vadd.f32 %v3261_v10, %v1420_v12  ;;  %v1418_v50 = vld [vmem:[#allocation2] sm:$0xff]  ;;  %1398 = vst.msk [vmem:[#allocation2 + $0x30] sm:$0xff] %vm622_vm1, %v1382_v45  ;;  %v1383_v13 = vadd.f32 %v3248_v36, %v1264_v33  ;;  %v1332_v17 = vpop.f32.mrb[43].mxu0 }
 0x20e   : > { %v1558_v29 = vadd.f32 %v1495_v11, %v1418_v50  ;;  %v1421_v48 = vld [vmem:[#allocation2 + $0x18] sm:$0xff]  ;;  %1396 = vst.msk [vmem:[#allocation2 + $0x20] sm:$0xff] %vm622_vm1, %v1380_v21  ;;  %v1381_v53 = vadd.f32 %v1332_v17, %v1262_v15  ;;  %v1271_v18 = vld [vmem:[#allocation2 + $0x70] sm:$0xff] }
 0x20f   : > { %1576 = vst.msk [vmem:[#allocation2 + $0x10] sm:$0xff] %vm622_vm1, %v1560_v47  ;;  %v1561_v57 = vadd.f32 %v3262_v44, %v1421_v48  ;;  %v1419_v41 = vld [vmem:[#allocation2 + $0x8] sm:$0xff]  ;;  %1399 = vst.msk [vmem:[#allocation2 + $0x38] sm:$0xff] %vm622_vm1, %v1383_v13  ;;  %v1269_v40 = vld [vmem:[#allocation2 + $0x60] sm:$0xff] }
 0x210   : > { %1574 = vst.msk [vmem:[#allocation2] sm:$0xff] %vm622_vm1, %v1558_v29  ;;  %v1559_v1 = vadd.f32 %v1498_v22, %v1419_v41  ;;  %1397 = vst.msk [vmem:[#allocation2 + $0x28] sm:$0xff] %vm622_vm1, %v1381_v53  ;;  %v3265_v3 = vpop.f32.mrb[20].mxu1  ;;  %v1272_v19 = vld [vmem:[#allocation2 + $0x78] sm:$0xff] }
 0x211   : > { %1577 = vst.msk [vmem:[#allocation2 + $0x18] sm:$0xff] %vm622_vm1, %v1561_v57  ;;  %v1511_v30 = vpop.f32.mrb[21].mxu1  ;;  %v1270_v11 = vld [vmem:[#allocation2 + $0x68] sm:$0xff] }
 0x212   : > { %1575 = vst.msk [vmem:[#allocation2 + $0x8] sm:$0xff] %vm622_vm1, %v1559_v1  ;;  %v3251_v35 = vpop.f32.mrb[44].mxu0  ;;  %v3266_v34 = vpop.f32.mrb[22].mxu1 }
 0x213   : > { %v1386_v58 = vadd.f32 %v3251_v35, %v1267_v37  ;;  %v1345_v38 = vpop.f32.mrb[45].mxu0  ;;  %v1514_v27 = vpop.f32.mrb[23].mxu1 }
 0x214   : > { %v1424_v7 = vld [vmem:[#allocation2 + $0x30] sm:$0xff]  ;;  %v1384_v62 = vadd.f32 %v1345_v38, %v1265_v14  ;;  %v3252_v4 = vpop.f32.mrb[46].mxu0 }
 0x215   : > { %v1564_v5 = vadd.f32 %v3265_v3, %v1424_v7  ;;  %v1422_v6 = vld [vmem:[#allocation2 + $0x20] sm:$0xff]  ;;  %1402 = vst.msk [vmem:[#allocation2 + $0x50] sm:$0xff] %vm622_vm1, %v1386_v58  ;;  %v1387_v26 = vadd.f32 %v3252_v4, %v1268_v63  ;;  %v1348_v20 = vpop.f32.mrb[47].mxu0 }
 0x216   : > { %v1562_v23 = vadd.f32 %v1511_v30, %v1422_v6  ;;  %v1425_v24 = vld [vmem:[#allocation2 + $0x38] sm:$0xff]  ;;  %1400 = vst.msk [vmem:[#allocation2 + $0x40] sm:$0xff] %vm622_vm1, %v1384_v62  ;;  %v1385_v25 = vadd.f32 %v1348_v20, %v1266_v16  ;;  %v1592_v36 = vld [vmem:[#allocation2 + $0x10] sm:$0xff] }
 0x217   : > { %1580 = vst.msk [vmem:[#allocation2 + $0x30] sm:$0xff] %vm622_vm1, %v1564_v5  ;;  %v1565_v42 = vadd.f32 %v3266_v34, %v1425_v24  ;;  %v1423_v55 = vld [vmem:[#allocation2 + $0x28] sm:$0xff]  ;;  %1403 = vst.msk [vmem:[#allocation2 + $0x58] sm:$0xff] %vm622_vm1, %v1387_v26  ;;  %v1590_v15 = vld [vmem:[#allocation2] sm:$0xff] }
 0x218   : > { %1578 = vst.msk [vmem:[#allocation2 + $0x20] sm:$0xff] %vm622_vm1, %v1562_v23  ;;  %v1563_v56 = vadd.f32 %v1514_v27, %v1423_v55  ;;  %1401 = vst.msk [vmem:[#allocation2 + $0x48] sm:$0xff] %vm622_vm1, %v1385_v25  ;;  %v3269_v46 = vpop.f32.mrb[24].mxu1  ;;  %v1593_v53 = vld [vmem:[#allocation2 + $0x18] sm:$0xff] }
 0x219   : > { %1581 = vst.msk [vmem:[#allocation2 + $0x38] sm:$0xff] %vm622_vm1, %v1565_v42  ;;  %v1527_v9 = vpop.f32.mrb[25].mxu1  ;;  %v1591_v30 = vld [vmem:[#allocation2 + $0x8] sm:$0xff] }
 0x21a   : > { %1579 = vst.msk [vmem:[#allocation2 + $0x28] sm:$0xff] %vm622_vm1, %v1563_v56  ;;  %v3255_v52 = vpop.f32.mrb[48].mxu0  ;;  %v3270_v28 = vpop.f32.mrb[26].mxu1 }
 0x21b   : > { %v1390_v32 = vadd.f32 %v3255_v52, %v1271_v18  ;;  %v1361_v61 = vpop.f32.mrb[49].mxu0  ;;  %v1530_v51 = vpop.f32.mrb[27].mxu1 }
 0x21c   : > { %v1428_v39 = vld [vmem:[#allocation2 + $0x50] sm:$0xff]  ;;  %v1388_v31 = vadd.f32 %v1361_v61, %v1269_v40  ;;  %v3256_v60 = vpop.f32.mrb[50].mxu0 }
 0x21d   : > { %v1568_v54 = vadd.f32 %v3269_v46, %v1428_v39  ;;  %v1426_v8 = vld [vmem:[#allocation2 + $0x40] sm:$0xff]  ;;  %1406 = vst.msk [vmem:[#allocation2 + $0x70] sm:$0xff] %vm622_vm1, %v1390_v32  ;;  %v1391_v10 = vadd.f32 %v3256_v60, %v1272_v19  ;;  %v1364_v59 = vpop.f32.mrb[51].mxu0 }
 0x21e   : > { %v1566_v0 = vadd.f32 %v1527_v9, %v1426_v8  ;;  %v1429_v44 = vld [vmem:[#allocation2 + $0x58] sm:$0xff]  ;;  %1404 = vst.msk [vmem:[#allocation2 + $0x60] sm:$0xff] %vm622_vm1, %v1388_v31  ;;  %v1389_v45 = vadd.f32 %v1364_v59, %v1270_v11  ;;  %v1596_v63 = vld [vmem:[#allocation2 + $0x30] sm:$0xff] }
 0x21f   : > { %1584 = vst.msk [vmem:[#allocation2 + $0x50] sm:$0xff] %vm622_vm1, %v1568_v54  ;;  %v1569_v2 = vadd.f32 %v3270_v28, %v1429_v44  ;;  %v1427_v49 = vld [vmem:[#allocation2 + $0x48] sm:$0xff]  ;;  %1407 = vst.msk [vmem:[#allocation2 + $0x78] sm:$0xff] %vm622_vm1, %v1391_v10  ;;  %v1594_v26 = vld [vmem:[#allocation2 + $0x20] sm:$0xff] }
 0x220   : > { %1582 = vst.msk [vmem:[#allocation2 + $0x40] sm:$0xff] %vm622_vm1, %v1566_v0  ;;  %v1567_v22 = vadd.f32 %v1530_v51, %v1427_v49  ;;  %1405 = vst.msk [vmem:[#allocation2 + $0x68] sm:$0xff] %vm622_vm1, %v1389_v45  ;;  %v3273_v12 = vpop.f32.mrb[28].mxu1  ;;  %v1597_v25 = vld [vmem:[#allocation2 + $0x38] sm:$0xff] }
 0x221   : > { %1585 = vst.msk [vmem:[#allocation2 + $0x58] sm:$0xff] %vm622_vm1, %v1569_v2  ;;  %v1543_v21 = vpop.f32.mrb[29].mxu1  ;;  %v1595_v9 = vld [vmem:[#allocation2 + $0x28] sm:$0xff] }
 0x222   : > { %1583 = vst.msk [vmem:[#allocation2 + $0x48] sm:$0xff] %vm622_vm1, %v1567_v22  ;;  %v3274_v33 = vpop.f32.mrb[30].mxu1  ;;  %v3279_v47 = vpop.f32.mrb[52].mxu0 }
 0x223   : > { %v1711_v50 = vadd.f32 %v3279_v47, %v1592_v36  ;;  %v1546_v13 = vpop.f32.mrb[31].mxu1  ;;  %v1646_v17 = vpop.f32.mrb[53].mxu0 }
 0x224   : > { %v1432_v29 = vld [vmem:[#allocation2 + $0x70] sm:$0xff]  ;;  %v1709_v48 = vadd.f32 %v1646_v17, %v1590_v15  ;;  %v3280_v57 = vpop.f32.mrb[54].mxu0 }
 0x225   : > { %v1572_v41 = vadd.f32 %v3273_v12, %v1432_v29  ;;  %v1430_v1 = vld [vmem:[#allocation2 + $0x60] sm:$0xff]  ;;  %1727 = vst.msk [vmem:[#allocation2 + $0x10] sm:$0xff] %vm622_vm1, %v1711_v50  ;;  %v1712_v3 = vadd.f32 %v3280_v57, %v1593_v53  ;;  %v1649_v37 = vpop.f32.mrb[55].mxu0 }
 0x226   : > { %v1570_v35 = vadd.f32 %v1543_v21, %v1430_v1  ;;  %v1433_v34 = vld [vmem:[#allocation2 + $0x78] sm:$0xff]  ;;  %1725 = vst.msk [vmem:[#allocation2] sm:$0xff] %vm622_vm1, %v1709_v48  ;;  %v1710_v58 = vadd.f32 %v1649_v37, %v1591_v30  ;;  %v1600_v19 = vld [vmem:[#allocation2 + $0x50] sm:$0xff] }
 0x227   : > { %1588 = vst.msk [vmem:[#allocation2 + $0x70] sm:$0xff] %vm622_vm1, %v1572_v41  ;;  %v1573_v14 = vadd.f32 %v3274_v33, %v1433_v34  ;;  %v1431_v38 = vld [vmem:[#allocation2 + $0x68] sm:$0xff]  ;;  %1728 = vst.msk [vmem:[#allocation2 + $0x18] sm:$0xff] %vm622_vm1, %v1712_v3  ;;  %v1598_v10 = vld [vmem:[#allocation2 + $0x40] sm:$0xff] }
 0x228   : > { %1586 = vst.msk [vmem:[#allocation2 + $0x60] sm:$0xff] %vm622_vm1, %v1570_v35  ;;  %v1571_v27 = vadd.f32 %v1546_v13, %v1431_v38  ;;  %1726 = vst.msk [vmem:[#allocation2 + $0x8] sm:$0xff] %vm622_vm1, %v1710_v58  ;;  %v3297_v7 = vpop.f32.mrb[32].mxu1  ;;  %v1601_v45 = vld [vmem:[#allocation2 + $0x58] sm:$0xff] }
 0x229   : > { %1589 = vst.msk [vmem:[#allocation2 + $0x78] sm:$0xff] %vm622_vm1, %v1573_v14  ;;  %v1797_v62 = vpop.f32.mrb[33].mxu1  ;;  %v1599_v21 = vld [vmem:[#allocation2 + $0x48] sm:$0xff] }
 0x22a   : > { %1587 = vst.msk [vmem:[#allocation2 + $0x68] sm:$0xff] %vm622_vm1, %v1571_v27  ;;  %v3283_v4 = vpop.f32.mrb[56].mxu0  ;;  %v3298_v5 = vpop.f32.mrb[34].mxu1 }
 0x22b   : > { %v1715_v6 = vadd.f32 %v3283_v4, %v1596_v63  ;;  %v1662_v16 = vpop.f32.mrb[57].mxu0  ;;  %v1800_v20 = vpop.f32.mrb[35].mxu1 }
 0x22c   : > { %v1743_v23 = vld [vmem:[#allocation2 + $0x10] sm:$0xff]  ;;  %v1713_v24 = vadd.f32 %v1662_v16, %v1594_v26  ;;  %v3284_v42 = vpop.f32.mrb[58].mxu0 }
 0x22d   : > { %v1862_v55 = vadd.f32 %v3297_v7, %v1743_v23  ;;  %v1741_v56 = vld [vmem:[#allocation2] sm:$0xff]  ;;  %1731 = vst.msk [vmem:[#allocation2 + $0x30] sm:$0xff] %vm622_vm1, %v1715_v6  ;;  %v1716_v46 = vadd.f32 %v3284_v42, %v1597_v25  ;;  %v1665_v18 = vpop.f32.mrb[59].mxu0 }
 0x22e   : > { %v1860_v52 = vadd.f32 %v1797_v62, %v1741_v56  ;;  %v1744_v28 = vld [vmem:[#allocation2 + $0x18] sm:$0xff]  ;;  %1729 = vst.msk [vmem:[#allocation2 + $0x20] sm:$0xff] %vm622_vm1, %v1713_v24  ;;  %v1714_v32 = vadd.f32 %v1665_v18, %v1595_v9  ;;  %v1604_v53 = vld [vmem:[#allocation2 + $0x70] sm:$0xff] }
 0x22f   : > { %1878 = vst.msk [vmem:[#allocation2 + $0x10] sm:$0xff] %vm622_vm1, %v1862_v55  ;;  %v1863_v40 = vadd.f32 %v3298_v5, %v1744_v28  ;;  %v1742_v61 = vld [vmem:[#allocation2 + $0x8] sm:$0xff]  ;;  %1732 = vst.msk [vmem:[#allocation2 + $0x38] sm:$0xff] %vm622_vm1, %v1716_v46  ;;  %v1602_v3 = vld [vmem:[#allocation2 + $0x60] sm:$0xff] }
 0x230   : > { %1876 = vst.msk [vmem:[#allocation2] sm:$0xff] %vm622_vm1, %v1860_v52  ;;  %v1861_v51 = vadd.f32 %v1800_v20, %v1742_v61  ;;  %1730 = vst.msk [vmem:[#allocation2 + $0x28] sm:$0xff] %vm622_vm1, %v1714_v32  ;;  %v3301_v39 = vpop.f32.mrb[36].mxu1  ;;  %v1605_v58 = vld [vmem:[#allocation2 + $0x78] sm:$0xff] }
 0x231   : > { %1879 = vst.msk [vmem:[#allocation2 + $0x18] sm:$0xff] %vm622_vm1, %v1863_v40  ;;  %v1813_v31 = vpop.f32.mrb[37].mxu1  ;;  %v1603_v62 = vld [vmem:[#allocation2 + $0x68] sm:$0xff] }
 0x232   : > { %1877 = vst.msk [vmem:[#allocation2 + $0x8] sm:$0xff] %vm622_vm1, %v1861_v51  ;;  %v3287_v60 = vpop.f32.mrb[60].mxu0  ;;  %v3302_v54 = vpop.f32.mrb[38].mxu1 }
 0x233   : > { %v1719_v8 = vadd.f32 %v3287_v60, %v1600_v19  ;;  %v1678_v11 = vpop.f32.mrb[61].mxu0  ;;  %v1816_v59 = vpop.f32.mrb[39].mxu1 }
 0x234   : > { %v1747_v0 = vld [vmem:[#allocation2 + $0x30] sm:$0xff]  ;;  %v1717_v44 = vadd.f32 %v1678_v11, %v1598_v10  ;;  %v3288_v2 = vpop.f32.mrb[62].mxu0 }
 0x235   : > { %v1866_v49 = vadd.f32 %v3301_v39, %v1747_v0  ;;  %v1745_v22 = vld [vmem:[#allocation2 + $0x20] sm:$0xff]  ;;  %1735 = vst.msk [vmem:[#allocation2 + $0x50] sm:$0xff] %vm622_vm1, %v1719_v8  ;;  %v1720_v12 = vadd.f32 %v3288_v2, %v1601_v45  ;;  %v1681_v33 = vpop.f32.mrb[63].mxu0 }
 0x236   : > { %v1864_v36 = vadd.f32 %v1813_v31, %v1745_v22  ;;  %v1748_v47 = vld [vmem:[#allocation2 + $0x38] sm:$0xff]  ;;  %1733 = vst.msk [vmem:[#allocation2 + $0x40] sm:$0xff] %vm622_vm1, %v1717_v44  ;;  %v1718_v50 = vadd.f32 %v1681_v33, %v1599_v21  ;;  %v1971_v42 = vld [vmem:[#allocation2 + $0x10] sm:$0xff] }
 0x237   : > { %1882 = vst.msk [vmem:[#allocation2 + $0x30] sm:$0xff] %vm622_vm1, %v1866_v49  ;;  %v1867_v13 = vadd.f32 %v3302_v54, %v1748_v47  ;;  %v1746_v15 = vld [vmem:[#allocation2 + $0x28] sm:$0xff]  ;;  %1736 = vst.msk [vmem:[#allocation2 + $0x58] sm:$0xff] %vm622_vm1, %v1720_v12  ;;  %v1969_v9 = vld [vmem:[#allocation2] sm:$0xff] }
 0x238   : > { %1880 = vst.msk [vmem:[#allocation2 + $0x20] sm:$0xff] %vm622_vm1, %v1864_v36  ;;  %v1865_v17 = vadd.f32 %v1816_v59, %v1746_v15  ;;  %1734 = vst.msk [vmem:[#allocation2 + $0x48] sm:$0xff] %vm622_vm1, %v1718_v50  ;;  %v3305_v29 = vpop.f32.mrb[40].mxu1  ;;  %v1972_v32 = vld [vmem:[#allocation2 + $0x18] sm:$0xff] }
 0x239   : > { %1883 = vst.msk [vmem:[#allocation2 + $0x38] sm:$0xff] %vm622_vm1, %v1867_v13  ;;  %v1829_v48 = vpop.f32.mrb[41].mxu1  ;;  %v1970_v31 = vld [vmem:[#allocation2 + $0x8] sm:$0xff] }
 0x23a   : > { %1881 = vst.msk [vmem:[#allocation2 + $0x28] sm:$0xff] %vm622_vm1, %v1865_v17  ;;  %v3291_v57 = vpop.f32.mrb[64].mxu0  ;;  %v3306_v41 = vpop.f32.mrb[42].mxu1 }
 0x23b   : > { %v1723_v1 = vadd.f32 %v3291_v57, %v1604_v53  ;;  %v1694_v30 = vpop.f32.mrb[65].mxu0  ;;  %v1832_v37 = vpop.f32.mrb[43].mxu1 }
 0x23c   : > { %v1751_v35 = vld [vmem:[#allocation2 + $0x50] sm:$0xff]  ;;  %v1721_v34 = vadd.f32 %v1694_v30, %v1602_v3  ;;  %v3292_v14 = vpop.f32.mrb[66].mxu0 }
 0x23d   : > { %v1870_v38 = vadd.f32 %v3305_v29, %v1751_v35  ;;  %v1749_v27 = vld [vmem:[#allocation2 + $0x40] sm:$0xff]  ;;  %1739 = vst.msk [vmem:[#allocation2 + $0x70] sm:$0xff] %vm622_vm1, %v1723_v1  ;;  %v1724_v7 = vadd.f32 %v3292_v14, %v1605_v58  ;;  %v1697_v63 = vpop.f32.mrb[67].mxu0 }
 0x23e   : > { %v1868_v4 = vadd.f32 %v1829_v48, %v1749_v27  ;;  %v1752_v5 = vld [vmem:[#allocation2 + $0x58] sm:$0xff]  ;;  %1737 = vst.msk [vmem:[#allocation2 + $0x60] sm:$0xff] %vm622_vm1, %v1721_v34  ;;  %v1722_v6 = vadd.f32 %v1697_v63, %v1603_v62  ;;  %v1975_v45 = vld [vmem:[#allocation2 + $0x30] sm:$0xff] }
 0x23f   : > { %1886 = vst.msk [vmem:[#allocation2 + $0x50] sm:$0xff] %vm622_vm1, %v1870_v38  ;;  %v1871_v26 = vadd.f32 %v3306_v41, %v1752_v5  ;;  %v1750_v16 = vld [vmem:[#allocation2 + $0x48] sm:$0xff]  ;;  %1740 = vst.msk [vmem:[#allocation2 + $0x78] sm:$0xff] %vm622_vm1, %v1724_v7  ;;  %v1973_v12 = vld [vmem:[#allocation2 + $0x20] sm:$0xff] }
 0x240   : > { %1884 = vst.msk [vmem:[#allocation2 + $0x40] sm:$0xff] %vm622_vm1, %v1868_v4  ;;  %v1869_v20 = vadd.f32 %v1832_v37, %v1750_v16  ;;  %1738 = vst.msk [vmem:[#allocation2 + $0x68] sm:$0xff] %vm622_vm1, %v1722_v6  ;;  %v3309_v23 = vpop.f32.mrb[44].mxu1  ;;  %v1976_v50 = vld [vmem:[#allocation2 + $0x38] sm:$0xff] }
 0x241   : > { %1887 = vst.msk [vmem:[#allocation2 + $0x58] sm:$0xff] %vm622_vm1, %v1871_v26  ;;  %v1845_v24 = vpop.f32.mrb[45].mxu1  ;;  %v1974_v48 = vld [vmem:[#allocation2 + $0x28] sm:$0xff] }
 0x242   : > { %1885 = vst.msk [vmem:[#allocation2 + $0x48] sm:$0xff] %vm622_vm1, %v1869_v20  ;;  %v3310_v25 = vpop.f32.mrb[46].mxu1  ;;  %v3315_v55 = vpop.f32.mrb[68].mxu0 }
 0x243   : > { %v2111_v56 = vadd.f32 %v3315_v55, %v1971_v42  ;;  %v1848_v46 = vpop.f32.mrb[47].mxu1  ;;  %v2046_v18 = vpop.f32.mrb[69].mxu0 }
 0x244   : > { %v1755_v52 = vld [vmem:[#allocation2 + $0x70] sm:$0xff]  ;;  %v2109_v28 = vadd.f32 %v2046_v18, %v1969_v9  ;;  %v3316_v40 = vpop.f32.mrb[70].mxu0 }
 0x245   : > { %v1874_v61 = vadd.f32 %v3309_v23, %v1755_v52  ;;  %v1753_v51 = vld [vmem:[#allocation2 + $0x60] sm:$0xff]  ;;  %2127 = vst.msk [vmem:[#allocation2 + $0x10] sm:$0xff] %vm622_vm1, %v2111_v56  ;;  %v2112_v39 = vadd.f32 %v3316_v40, %v1972_v32  ;;  %v2049_v19 = vpop.f32.mrb[71].mxu0 }
 0x246   : > { %v1872_v60 = vadd.f32 %v1845_v24, %v1753_v51  ;;  %v1756_v54 = vld [vmem:[#allocation2 + $0x78] sm:$0xff]  ;;  %2125 = vst.msk [vmem:[#allocation2] sm:$0xff] %vm622_vm1, %v2109_v28  ;;  %v2110_v8 = vadd.f32 %v2049_v19, %v1970_v31  ;;  %v1979_v58 = vld [vmem:[#allocation2 + $0x50] sm:$0xff] }
 0x247   : > { %1890 = vst.msk [vmem:[#allocation2 + $0x70] sm:$0xff] %vm622_vm1, %v1874_v61  ;;  %v1875_v10 = vadd.f32 %v3310_v25, %v1756_v54  ;;  %v1754_v11 = vld [vmem:[#allocation2 + $0x68] sm:$0xff]  ;;  %2128 = vst.msk [vmem:[#allocation2 + $0x18] sm:$0xff] %vm622_vm1, %v2112_v39  ;;  %v1977_v7 = vld [vmem:[#allocation2 + $0x40] sm:$0xff] }
 0x248   : > { %1888 = vst.msk [vmem:[#allocation2 + $0x60] sm:$0xff] %vm622_vm1, %v1872_v60  ;;  %v1873_v59 = vadd.f32 %v1848_v46, %v1754_v11  ;;  %2126 = vst.msk [vmem:[#allocation2 + $0x8] sm:$0xff] %vm622_vm1, %v2110_v8  ;;  %v3333_v0 = vpop.f32.mrb[48].mxu1  ;;  %v1980_v6 = vld [vmem:[#allocation2 + $0x58] sm:$0xff] }
 0x249   : > { %1891 = vst.msk [vmem:[#allocation2 + $0x78] sm:$0xff] %vm622_vm1, %v1875_v10  ;;  %v2197_v44 = vpop.f32.mrb[49].mxu1  ;;  %v1978_v24 = vld [vmem:[#allocation2 + $0x48] sm:$0xff] }
 0x24a   : > { %1889 = vst.msk [vmem:[#allocation2 + $0x68] sm:$0xff] %vm622_vm1, %v1873_v59  ;;  %v3319_v2 = vpop.f32.mrb[72].mxu0  ;;  %v3334_v49 = vpop.f32.mrb[50].mxu1 }
 0x24b   : > { %v2115_v22 = vadd.f32 %v3319_v2, %v1975_v45  ;;  %v2062_v21 = vpop.f32.mrb[73].mxu0  ;;  %v2200_v33 = vpop.f32.mrb[51].mxu1 }
 0x24c   : > { %v2143_v36 = vld [vmem:[#allocation2 + $0x10] sm:$0xff]  ;;  %v2113_v47 = vadd.f32 %v2062_v21, %v1973_v12  ;;  %v3320_v13 = vpop.f32.mrb[74].mxu0 }
 0x24d   : > { %v2262_v15 = vadd.f32 %v3333_v0, %v2143_v36  ;;  %v2141_v17 = vld [vmem:[#allocation2] sm:$0xff]  ;;  %2131 = vst.msk [vmem:[#allocation2 + $0x30] sm:$0xff] %vm622_vm1, %v2115_v22  ;;  %v2116_v29 = vadd.f32 %v3320_v13, %v1976_v50  ;;  %v2065_v53 = vpop.f32.mrb[75].mxu0 }
 0x24e   : > { %v2260_v57 = vadd.f32 %v2197_v44, %v2141_v17  ;;  %v2144_v41 = vld [vmem:[#allocation2 + $0x18] sm:$0xff]  ;;  %2129 = vst.msk [vmem:[#allocation2 + $0x20] sm:$0xff] %vm622_vm1, %v2113_v47  ;;  %v2114_v1 = vadd.f32 %v2065_v53, %v1974_v48  ;;  %v1983_v32 = vld [vmem:[#allocation2 + $0x70] sm:$0xff] }
 0x24f   : > { %2278 = vst.msk [vmem:[#allocation2 + $0x10] sm:$0xff] %vm622_vm1, %v2262_v15  ;;  %v2263_v3 = vadd.f32 %v3334_v49, %v2144_v41  ;;  %v2142_v30 = vld [vmem:[#allocation2 + $0x8] sm:$0xff]  ;;  %2132 = vst.msk [vmem:[#allocation2 + $0x38] sm:$0xff] %vm622_vm1, %v2116_v29  ;;  %v1981_v39 = vld [vmem:[#allocation2 + $0x60] sm:$0xff] }
 0x250   : > { %2276 = vst.msk [vmem:[#allocation2] sm:$0xff] %vm622_vm1, %v2260_v57  ;;  %v2261_v37 = vadd.f32 %v2200_v33, %v2142_v30  ;;  %2130 = vst.msk [vmem:[#allocation2 + $0x28] sm:$0xff] %vm622_vm1, %v2114_v1  ;;  %v3337_v35 = vpop.f32.mrb[52].mxu1  ;;  %v1984_v8 = vld [vmem:[#allocation2 + $0x78] sm:$0xff] }
 0x251   : > { %2279 = vst.msk [vmem:[#allocation2 + $0x18] sm:$0xff] %vm622_vm1, %v2263_v3  ;;  %v2213_v34 = vpop.f32.mrb[53].mxu1  ;;  %v1982_v44 = vld [vmem:[#allocation2 + $0x68] sm:$0xff] }
 0x252   : > { %2277 = vst.msk [vmem:[#allocation2 + $0x8] sm:$0xff] %vm622_vm1, %v2261_v37  ;;  %v3323_v14 = vpop.f32.mrb[76].mxu0  ;;  %v3338_v38 = vpop.f32.mrb[54].mxu1 }
 0x253   : > { %v2119_v27 = vadd.f32 %v3323_v14, %v1979_v58  ;;  %v2078_v62 = vpop.f32.mrb[77].mxu0  ;;  %v2216_v63 = vpop.f32.mrb[55].mxu1 }
 0x254   : > { %v2147_v4 = vld [vmem:[#allocation2 + $0x30] sm:$0xff]  ;;  %v2117_v5 = vadd.f32 %v2078_v62, %v1977_v7  ;;  %v3324_v26 = vpop.f32.mrb[78].mxu0 }
 0x255   : > { %v2266_v16 = vadd.f32 %v3337_v35, %v2147_v4  ;;  %v2145_v20 = vld [vmem:[#allocation2 + $0x20] sm:$0xff]  ;;  %2135 = vst.msk [vmem:[#allocation2 + $0x50] sm:$0xff] %vm622_vm1, %v2119_v27  ;;  %v2120_v23 = vadd.f32 %v3324_v26, %v1980_v6  ;;  %v2081_v25 = vpop.f32.mrb[79].mxu0 }
 0x256   : > { %v2264_v42 = vadd.f32 %v2213_v34, %v2145_v20  ;;  %v2148_v55 = vld [vmem:[#allocation2 + $0x38] sm:$0xff]  ;;  %2133 = vst.msk [vmem:[#allocation2 + $0x40] sm:$0xff] %vm622_vm1, %v2117_v5  ;;  %v2118_v56 = vadd.f32 %v2081_v25, %v1978_v24  ;;  %v2294_v13 = vld [vmem:[#allocation2 + $0x10] sm:$0xff] }
 0x257   : > { %2282 = vst.msk [vmem:[#allocation2 + $0x30] sm:$0xff] %vm622_vm1, %v2266_v16  ;;  %v2267_v46 = vadd.f32 %v3338_v38, %v2148_v55  ;;  %v2146_v9 = vld [vmem:[#allocation2 + $0x28] sm:$0xff]  ;;  %2136 = vst.msk [vmem:[#allocation2 + $0x58] sm:$0xff] %vm622_vm1, %v2120_v23  ;;  %v2292_v48 = vld [vmem:[#allocation2] sm:$0xff] }
 0x258   : > { %2280 = vst.msk [vmem:[#allocation2 + $0x20] sm:$0xff] %vm622_vm1, %v2264_v42  ;;  %v2265_v18 = vadd.f32 %v2216_v63, %v2146_v9  ;;  %2134 = vst.msk [vmem:[#allocation2 + $0x48] sm:$0xff] %vm622_vm1, %v2118_v56  ;;  %v3341_v52 = vpop.f32.mrb[56].mxu1  ;;  %v2295_v1 = vld [vmem:[#allocation2 + $0x18] sm:$0xff] }
 0x259   : > { %2283 = vst.msk [vmem:[#allocation2 + $0x38] sm:$0xff] %vm622_vm1, %v2267_v46  ;;  %v2229_v28 = vpop.f32.mrb[57].mxu1  ;;  %v2293_v34 = vld [vmem:[#allocation2 + $0x8] sm:$0xff] }
 0x25a   : > { %2281 = vst.msk [vmem:[#allocation2 + $0x28] sm:$0xff] %vm622_vm1, %v2265_v18  ;;  %v3327_v40 = vpop.f32.mrb[80].mxu0  ;;  %v3342_v61 = vpop.f32.mrb[58].mxu1 }
 0x25b   : > { %v2123_v51 = vadd.f32 %v3327_v40, %v1983_v32  ;;  %v2094_v31 = vpop.f32.mrb[81].mxu0  ;;  %v2232_v19 = vpop.f32.mrb[59].mxu1 }
 0x25c   : > { %v2151_v60 = vld [vmem:[#allocation2 + $0x50] sm:$0xff]  ;;  %v2121_v54 = vadd.f32 %v2094_v31, %v1981_v39  ;;  %v3328_v10 = vpop.f32.mrb[82].mxu0 }
 0x25d   : > { %v2270_v11 = vadd.f32 %v3341_v52, %v2151_v60  ;;  %v2149_v59 = vld [vmem:[#allocation2 + $0x40] sm:$0xff]  ;;  %2139 = vst.msk [vmem:[#allocation2 + $0x70] sm:$0xff] %vm622_vm1, %v2123_v51  ;;  %v2124_v0 = vadd.f32 %v3328_v10, %v1984_v8  ;;  %v2097_v45 = vpop.f32.mrb[83].mxu0  ;;  %v2624_v10 = vsel %vm653_vm0, %v4450_v43, 0 }
 0x25e   : > { %v2268_v2 = vadd.f32 %v2229_v28, %v2149_v59  ;;  %v2152_v49 = vld [vmem:[#allocation2 + $0x58] sm:$0xff]  ;;  %2137 = vst.msk [vmem:[#allocation2 + $0x60] sm:$0xff] %vm622_vm1, %v2121_v54  ;;  %v2122_v22 = vadd.f32 %v2097_v45, %v1982_v44  ;;  %v2298_v4 = vld [vmem:[#allocation2 + $0x30] sm:$0xff] }
 0x25f   : > { %2286 = vst.msk [vmem:[#allocation2 + $0x50] sm:$0xff] %vm622_vm1, %v2270_v11  ;;  %v2271_v12 = vadd.f32 %v3342_v61, %v2152_v49  ;;  %v2150_v21 = vld [vmem:[#allocation2 + $0x48] sm:$0xff]  ;;  %2140 = vst.msk [vmem:[#allocation2 + $0x78] sm:$0xff] %vm622_vm1, %v2124_v0  ;;  %v2296_v26 = vld [vmem:[#allocation2 + $0x20] sm:$0xff] }
 0x260   : > { %2284 = vst.msk [vmem:[#allocation2 + $0x40] sm:$0xff] %vm622_vm1, %v2268_v2  ;;  %v2269_v33 = vadd.f32 %v2232_v19, %v2150_v21  ;;  %2138 = vst.msk [vmem:[#allocation2 + $0x68] sm:$0xff] %vm622_vm1, %v2122_v22  ;;  %v3345_v36 = vpop.f32.mrb[60].mxu1  ;;  %v2299_v23 = vld [vmem:[#allocation2 + $0x38] sm:$0xff] }
 0x261   : > { %2287 = vst.msk [vmem:[#allocation2 + $0x58] sm:$0xff] %vm622_vm1, %v2271_v12  ;;  %v2245_v47 = vpop.f32.mrb[61].mxu1  ;;  %v2297_v42 = vld [vmem:[#allocation2 + $0x28] sm:$0xff] }
 0x262   : > { %2285 = vst.msk [vmem:[#allocation2 + $0x48] sm:$0xff] %vm622_vm1, %v2269_v33  ;;  %v3346_v50 = vpop.f32.mrb[62].mxu1  ;;  %v3351_v15 = vpop.f32.mrb[84].mxu0 }
 0x263   : > { %v2413_v17 = vadd.f32 %v3351_v15, %v2294_v13  ;;  %v2248_v29 = vpop.f32.mrb[63].mxu1  ;;  %v2348_v53 = vpop.f32.mrb[85].mxu0 }
 0x264   : > { %v2155_v57 = vld [vmem:[#allocation2 + $0x70] sm:$0xff]  ;;  %v2411_v41 = vadd.f32 %v2348_v53, %v2292_v48  ;;  %v3352_v3 = vpop.f32.mrb[86].mxu0 }
 0x265   : > { %v2274_v30 = vadd.f32 %v3345_v36, %v2155_v57  ;;  %v2153_v37 = vld [vmem:[#allocation2 + $0x60] sm:$0xff]  ;;  %2429 = vst.msk [vmem:[#allocation2 + $0x10] sm:$0xff] %vm622_vm1, %v2413_v17  ;;  %v2414_v35 = vadd.f32 %v3352_v3, %v2295_v1  ;;  %v2351_v58 = vpop.f32.mrb[87].mxu0 }
 0x266   : > { %v2272_v14 = vadd.f32 %v2245_v47, %v2153_v37  ;;  %v2156_v38 = vld [vmem:[#allocation2 + $0x78] sm:$0xff]  ;;  %2427 = vst.msk [vmem:[#allocation2] sm:$0xff] %vm622_vm1, %v2411_v41  ;;  %v2412_v27 = vadd.f32 %v2351_v58, %v2293_v34  ;;  %v2302_v51 = vld [vmem:[#allocation2 + $0x50] sm:$0xff] }
 0x267   : > { %2290 = vst.msk [vmem:[#allocation2 + $0x70] sm:$0xff] %vm622_vm1, %v2274_v30  ;;  %v2275_v7 = vadd.f32 %v3346_v50, %v2156_v38  ;;  %v2154_v62 = vld [vmem:[#allocation2 + $0x68] sm:$0xff]  ;;  %2430 = vst.msk [vmem:[#allocation2 + $0x18] sm:$0xff] %vm622_vm1, %v2414_v35  ;;  %v2300_v60 = vld [vmem:[#allocation2 + $0x40] sm:$0xff] }
 0x268   : > { %2288 = vst.msk [vmem:[#allocation2 + $0x60] sm:$0xff] %vm622_vm1, %v2272_v14  ;;  %v2273_v63 = vadd.f32 %v2248_v29, %v2154_v62  ;;  %2428 = vst.msk [vmem:[#allocation2 + $0x8] sm:$0xff] %vm622_vm1, %v2412_v27  ;;  %v2303_v59 = vld [vmem:[#allocation2 + $0x58] sm:$0xff] }
 0x269   : > { %2291 = vst.msk [vmem:[#allocation2 + $0x78] sm:$0xff] %vm622_vm1, %v2275_v7  ;;  %v2301_v45 = vld [vmem:[#allocation2 + $0x48] sm:$0xff] }
 0x26a   : > { %2289 = vst.msk [vmem:[#allocation2 + $0x68] sm:$0xff] %vm622_vm1, %v2273_v63  ;;  %v3355_v5 = vpop.f32.mrb[88].mxu0 }
 0x26b   : > { %v2417_v6 = vadd.f32 %v3355_v5, %v2298_v4  ;;  %v2364_v16 = vpop.f32.mrb[89].mxu0 }
 0x26c   : > { %v2415_v20 = vadd.f32 %v2364_v16, %v2296_v26  ;;  %v3356_v24 = vpop.f32.mrb[90].mxu0  ;;  %v2445_v9 = vld [vmem:[#allocation2 + $0x10] sm:$0xff] }
 0x26d   : > { %2433 = vst.msk [vmem:[#allocation2 + $0x30] sm:$0xff] %vm622_vm1, %v2417_v6  ;;  %v2418_v25 = vadd.f32 %v3356_v24, %v2299_v23  ;;  %v2367_v55 = vpop.f32.mrb[91].mxu0  ;;  %v2443_v56 = vld [vmem:[#allocation2] sm:$0xff]  ;;  %v2461_v61 = vmax.f32 %v2445_v9, 0.0 }
 0x26e   : > { %2431 = vst.msk [vmem:[#allocation2 + $0x20] sm:$0xff] %vm622_vm1, %v2415_v20  ;;  %v2416_v46 = vadd.f32 %v2367_v55, %v2297_v42  ;;  %v2446_v18 = vld [vmem:[#allocation2 + $0x18] sm:$0xff]  ;;  %v2459_v32 = vmax.f32 %v2443_v56, 0.0  ;;  %v2306_v13 = vld [vmem:[#allocation2 + $0x70] sm:$0xff]  ;;  %v3544_v9 = vld [vmem:[%s3797_s12] sm:$0xff]  }
 0x26f   : > { %2434 = vst.msk [vmem:[#allocation2 + $0x38] sm:$0xff] %vm622_vm1, %v2418_v25  ;;  %v2444_v52 = vld [vmem:[#allocation2 + $0x8] sm:$0xff]  ;;  %v2462_v28 = vmax.f32 %v2446_v18, 0.0  ;;  %v2304_v48 = vld [vmem:[#allocation2 + $0x60] sm:$0xff] }
 0x270   : > { %2432 = vst.msk [vmem:[#allocation2 + $0x28] sm:$0xff] %vm622_vm1, %v2416_v46  ;;  %v2460_v40 = vmax.f32 %v2444_v52, 0.0  ;;  %v2307_v1 = vld [vmem:[#allocation2 + $0x78] sm:$0xff]  ;;  %v3545_v18 = vld [vmem:[%s3797_s12 + $0x8] sm:$0xff]   ;;  %v3546_v52 = vld [vmem:[%s3797_s12 + $0x10] sm:$0xff]  }
 0x271   : > { %v2476_v8 = vpack.c.bf16 %v2462_v28, %v2461_v61  ;;  %v2305_v37 = vld [vmem:[#allocation2 + $0x68] sm:$0xff]  ;;  %v3547_v28 = vld [vmem:[%s3797_s12 + $0x18] sm:$0xff]   ;;  %v3550_v61 = vld [vmem:[%s3797_s12 + $0x30] sm:$0xff]  }
 0x272   : > { %v3359_v39 = vpop.f32.mrb[92].mxu0  ;;  %v2475_v31 = vpack.c.bf16 %v2460_v40, %v2459_v32  ;;  %v3548_v32 = vld [vmem:[%s3797_s12 + $0x20] sm:$0xff]   ;;  %v3549_v40 = vld [vmem:[%s3797_s12 + $0x28] sm:$0xff]  }
 0x273   : > { %v2421_v19 = vadd.f32 %v3359_v39, %v2302_v51  ;;  %v2380_v54 = vpop.f32.mrb[93].mxu0  ;;  %v3551_v51 = vld [vmem:[%s3797_s12 + $0x38] sm:$0xff]   ;;  %v3043_v39 = vld [vmem:[%s4739_s8] ss:$0 sm:$0xff]  ;;  %s4621_s12 = scalar_lea.vmem [#allocation3], %s2927_s13 }
 0x274   : > { %v2419_v11 = vadd.f32 %v2380_v54, %v2300_v60  ;;  %v3360_v0 = vpop.f32.mrb[94].mxu0  ;;  %3367 = vmatprep.mubr.msk.bf16.mxu1 %vm622_vm1, %v2475_v31  ;;  %v2449_v12 = vld [vmem:[#allocation2 + $0x30] sm:$0xff]  ;;  %v3052_v31 = vld [vmem:[%s4741_s10] ss:$0 sm:$0xff]  ;;  %s2789_s21 = sshll.u32 %s4621_s12, 4  ;;  %s4669_s21 = int_to_ptr.vmem [resolvable:$true] %s2789_s21 }
 0x275   : > { %2437 = vst.msk [vmem:[#allocation2 + $0x50] sm:$0xff] %vm622_vm1, %v2421_v19  ;;  %v2422_v44 = vadd.f32 %v3360_v0, %v2303_v59  ;;  %v2383_v2 = vpop.f32.mrb[95].mxu0  ;;  %3368 = vmatmul.mubr.msk.bf16.vlgmr.msra.gmra.mrb[64].mxu1 %vm622_vm1, %v2476_v8  ;;  %v2447_v49 = vld [vmem:[#allocation2 + $0x20] sm:$0xff]  ;;  %v2465_v50 = vmax.f32 %v2449_v12, 0.0  ;;  %v4615_v19 = vadd.f32 %v3052_v31, %v3043_v39  ;;  %s3552_s16 = scalar_lea.vmem %s4669_s21, 2048  ;;  %p3559_p10 = scmp.lt.s32.totalorder %s4669_s21, %s3557_s29 }
 0x276   : > { %2435 = vst.msk [vmem:[#allocation2 + $0x40] sm:$0xff] %vm622_vm1, %v2419_v11  ;;  %v2420_v22 = vadd.f32 %v2383_v2, %v2301_v45  ;;  %3384 = vmatpush3.bf16.msra.mxu1 %v2624_v10  ;;  %v2450_v21 = vld [vmem:[#allocation2 + $0x38] sm:$0xff]  ;;  %v2463_v36 = vmax.f32 %v2447_v49, 0.0  ;;  %p3553_p6 = scmp.ne.s32.totalorder %s4669_s21, %s3552_s16  ;;  %p3560_p11 = scmp.lt.s32.totalorder %s3558_s0, %s3552_s16 }
 0x277   : > { %2438 = vst.msk [vmem:[#allocation2 + $0x58] sm:$0xff] %vm622_vm1, %v2422_v44  ;;  %v2448_v43 = vld [vmem:[#allocation2 + $0x28] sm:$0xff]  ;;  %v2466_v33 = vmax.f32 %v2450_v21, 0.0 }
 0x278   : > { %2436 = vst.msk [vmem:[#allocation2 + $0x48] sm:$0xff] %vm622_vm1, %v2420_v22  ;;  %v2464_v47 = vmax.f32 %v2448_v43, 0.0  ;;  %p3554_p7 = pnand %p3553_p6, %p3762_p3  ;;  %p3561_p12 = por %p3560_p11, %p3559_p10 }
 0x279   : > { %v2478_v57 = vpack.c.bf16 %v2466_v33, %v2465_v50 }
 0x27a   : > { %v3363_v15 = vpop.f32.mrb[96].mxu0  ;;  %v2477_v17 = vpack.c.bf16 %v2464_v47, %v2463_v36  ;;  %p3555_p9 = pneg %p3554_p7 }
 0x27b   : > { %v2425_v29 = vadd.f32 %v3363_v15, %v2306_v13  ;;  %v2396_v53 = vpop.f32.mrb[97].mxu0 }
 0x27c   : > { %v2423_v41 = vadd.f32 %v2396_v53, %v2304_v48  ;;  %v3364_v3 = vpop.f32.mrb[98].mxu0  ;;  %3371 = vmatprep.mubr.msk.bf16.mxu1 %vm622_vm1, %v2477_v17  ;;  %v2453_v14 = vld [vmem:[#allocation2 + $0x50] sm:$0xff]  ;;  %p3562_p13 = pnand %p3561_p12, %p3555_p9 }
 0x27d   : > { %2441 = vst.msk [vmem:[#allocation2 + $0x70] sm:$0xff] %vm622_vm1, %v2425_v29  ;;  %v2426_v30 = vadd.f32 %v3364_v3, %v2307_v1  ;;  %v2399_v35 = vpop.f32.mrb[99].mxu0  ;;  %3372 = vmatmul.mubr.msk.bf16.gmra.mrb[68].mxu1 %vm622_vm1, %v2478_v57  ;;  %v2451_v34 = vld [vmem:[#allocation2 + $0x40] sm:$0xff]  ;;  %v2469_v4 = vmax.f32 %v2453_v14, 0.0 }
 0x27e   : > { %2439 = vst.msk [vmem:[#allocation2 + $0x60] sm:$0xff] %vm622_vm1, %v2423_v41  ;;  %v2424_v58 = vadd.f32 %v2399_v35, %v2305_v37  ;;  %v2454_v38 = vld [vmem:[#allocation2 + $0x58] sm:$0xff]  ;;  %v2467_v62 = vmax.f32 %v2451_v34, 0.0 }
 0x27f   : > { %2442 = vst.msk [vmem:[#allocation2 + $0x78] sm:$0xff] %vm622_vm1, %v2426_v30  ;;  %v2452_v27 = vld [vmem:[#allocation2 + $0x48] sm:$0xff]  ;;  %v2470_v7 = vmax.f32 %v2454_v38, 0.0 }
 0x280   : > { %2440 = vst.msk [vmem:[#allocation2 + $0x68] sm:$0xff] %vm622_vm1, %v2424_v58  ;;  %v2468_v63 = vmax.f32 %v2452_v27, 0.0 }
 0x281   : > { %v2480_v6 = vpack.c.bf16 %v2470_v7, %v2469_v4 }
 0x282   : > { %v2479_v5 = vpack.c.bf16 %v2468_v63, %v2467_v62 }
 0x284   : > { %3375 = vmatprep.mubr.msk.bf16.mxu1 %vm622_vm1, %v2479_v5  ;;  %v2457_v16 = vld [vmem:[#allocation2 + $0x70] sm:$0xff] }
 0x285   : > { %3376 = vmatmul.mubr.msk.bf16.gmra.mrb[72].mxu1 %vm622_vm1, %v2480_v6  ;;  %v2455_v26 = vld [vmem:[#allocation2 + $0x60] sm:$0xff]  ;;  %v2473_v55 = vmax.f32 %v2457_v16, 0.0 }
 0x286   : > { %v2458_v20 = vld [vmem:[#allocation2 + $0x78] sm:$0xff]  ;;  %v2471_v25 = vmax.f32 %v2455_v26, 0.0 }
 0x287   : > { %v2456_v23 = vld [vmem:[#allocation2 + $0x68] sm:$0xff]  ;;  %v2474_v24 = vmax.f32 %v2458_v20, 0.0 }
 0x288   : > { %v2472_v42 = vmax.f32 %v2456_v23, 0.0 }
 0x289   : > { %v2482_v46 = vpack.c.bf16 %v2474_v24, %v2473_v55 }
 0x28a   : > { %v2481_v56 = vpack.c.bf16 %v2472_v42, %v2471_v25 }
 0x28c   : > { %3379 = vmatprep.mubr.msk.bf16.mxu1 %vm622_vm1, %v2481_v56 }
 0x28d   : > { %3380 = vmatmul.mubr.msk.bf16.gmra.mrb[76].mxu1 %vm622_vm1, %v2482_v46 }
 0x28e   : > { %3385 = vmatprep.mubr.msk.bf16.mxu1 %vm622_vm1, %v3544_v9 }
 0x295   : > { %3386 = vmatmul.mubr.msk.bf16.vlgmr.msra.gmra.mrb[64].mxu1 %vm622_vm1, %v3545_v18 }
 0x296   : > { %3389 = vmatprep.mubr.msk.bf16.mxu1 %vm622_vm1, %v3546_v52 }
 0x29d   : > { %3390 = vmatmul.mubr.msk.bf16.gmra.mrb[68].mxu1 %vm622_vm1, %v3547_v28 }
 0x29e   : > { %3393 = vmatprep.mubr.msk.bf16.mxu1 %vm622_vm1, %v3548_v32 }
 0x2a5   : > { %3394 = vmatmul.mubr.msk.bf16.gmra.mrb[72].mxu1 %vm622_vm1, %v3549_v40 }
 0x2a6   : > { %3397 = vmatprep.mubr.msk.bf16.mxu1 %vm622_vm1, %v3550_v61 }
 0x2ad   : > { %3398 = vmatmul.mubr.msk.bf16.gmra.mrb[76].mxu1 %vm622_vm1, %v3551_v51 }
 0x368   : > { %v3387_v60 = vpop.f32.mrb[64].mxu1 }
 0x369   : > { %v3401_v54 = vadd.f32 %v3387_v60, %v3043_v39  ;;  %v2660_v8 = vpop.f32.mrb[65].mxu1 }
 0x36a   : > { %v3403_v10 = vadd.f32 %v3043_v39, %v2660_v8  ;;  %v3388_v11 = vpop.f32.mrb[66].mxu1 }
 0x36b   : > { %v3402_v59 = vadd.f32 %v3401_v54, %v3052_v31  ;;  %v3406_v0 = vadd.f32 %v4615_v19, %v3388_v11  ;;  %v2663_v44 = vpop.f32.mrb[67].mxu1 }
 0x36c   : > { %v3404_v45 = vadd.f32 %v3403_v10, %v3052_v31  ;;  %v3408_v2 = vadd.f32 %v4615_v19, %v2663_v44 }
 0x36d   : > { %v2741_v49 = vmax.f32 %v3402_v59, 0.0  ;;  %v2742_v22 = vmax.f32 %v3406_v0, 0.0 }
 0x36e   : > { %v2739_v12 = vmax.f32 %v3404_v45, 0.0  ;;  %v2740_v21 = vmax.f32 %v3408_v2, 0.0 }
 0x36f   : > { %2758 = vst.msk [vmem:[%s4621_s12 + $0x10] sm:$0xff] %vm2755_vm8, %v2741_v49  ;;  %2759 = vst.msk [vmem:[%s4621_s12 + $0x18] sm:$0xff] %vm2755_vm8, %v2742_v22 }
 0x370   : > { %2756 = vst.msk [vmem:[%s4621_s12] sm:$0xff] %vm2755_vm8, %v2739_v12  ;;  %2757 = vst.msk [vmem:[%s4621_s12 + $0x8] sm:$0xff] %vm2755_vm8, %v2740_v21  ;;  %v3391_v43 = vpop.f32.mrb[68].mxu1 }
 0x371   : > { %v3410_v33 = vadd.f32 %v4615_v19, %v3391_v43  ;;  %v2676_v36 = vpop.f32.mrb[69].mxu1 }
 0x372   : > { %v3412_v47 = vadd.f32 %v4615_v19, %v2676_v36  ;;  %v3392_v50 = vpop.f32.mrb[70].mxu1 }
 0x373   : > { %v2745_v13 = vmax.f32 %v3410_v33, 0.0  ;;  %v3414_v15 = vadd.f32 %v4615_v19, %v3392_v50  ;;  %v2679_v17 = vpop.f32.mrb[71].mxu1 }
 0x374   : > { %v2743_v29 = vmax.f32 %v3412_v47, 0.0  ;;  %v3416_v48 = vadd.f32 %v4615_v19, %v2679_v17 }
 0x375   : > { %2762 = vst.msk [vmem:[%s4621_s12 + $0x30] sm:$0xff] %vm2755_vm8, %v2745_v13  ;;  %v2746_v53 = vmax.f32 %v3414_v15, 0.0 }
 0x376   : > { %2760 = vst.msk [vmem:[%s4621_s12 + $0x20] sm:$0xff] %vm2755_vm8, %v2743_v29  ;;  %v2744_v57 = vmax.f32 %v3416_v48, 0.0 }
 0x377   : > { %2763 = vst.msk [vmem:[%s4621_s12 + $0x38] sm:$0xff] %vm2755_vm8, %v2746_v53 }
 0x378   : > { %2761 = vst.msk [vmem:[%s4621_s12 + $0x28] sm:$0xff] %vm2755_vm8, %v2744_v57  ;;  %v3395_v41 = vpop.f32.mrb[72].mxu1 }
 0x379   : > { %v3418_v1 = vadd.f32 %v4615_v19, %v3395_v41  ;;  %v2692_v3 = vpop.f32.mrb[73].mxu1 }
 0x37a   : > { %v3420_v30 = vadd.f32 %v4615_v19, %v2692_v3  ;;  %v3396_v37 = vpop.f32.mrb[74].mxu1 }
 0x37b   : > { %v2749_v35 = vmax.f32 %v3418_v1, 0.0  ;;  %v3422_v34 = vadd.f32 %v4615_v19, %v3396_v37  ;;  %v2695_v58 = vpop.f32.mrb[75].mxu1 }
 0x37c   : > { %v2747_v14 = vmax.f32 %v3420_v30, 0.0  ;;  %v3424_v38 = vadd.f32 %v4615_v19, %v2695_v58 }
 0x37d   : > { %2766 = vst.msk [vmem:[%s4621_s12 + $0x50] sm:$0xff] %vm2755_vm8, %v2749_v35  ;;  %v2750_v27 = vmax.f32 %v3422_v34, 0.0 }
 0x37e   : > { %2764 = vst.msk [vmem:[%s4621_s12 + $0x40] sm:$0xff] %vm2755_vm8, %v2747_v14  ;;  %v2748_v7 = vmax.f32 %v3424_v38, 0.0 }
 0x37f   : > { %2767 = vst.msk [vmem:[%s4621_s12 + $0x58] sm:$0xff] %vm2755_vm8, %v2750_v27 }
 0x380   : > { %2765 = vst.msk [vmem:[%s4621_s12 + $0x48] sm:$0xff] %vm2755_vm8, %v2748_v7  ;;  %v3399_v62 = vpop.f32.mrb[76].mxu1 }
 0x381   : > { %v3426_v63 = vadd.f32 %v4615_v19, %v3399_v62  ;;  %v2708_v4 = vpop.f32.mrb[77].mxu1 }
 0x382   : > { %v3428_v5 = vadd.f32 %v4615_v19, %v2708_v4  ;;  %v3400_v6 = vpop.f32.mrb[78].mxu1 }
 0x383   : > { %v2753_v26 = vmax.f32 %v3426_v63, 0.0  ;;  %v3430_v16 = vadd.f32 %v4615_v19, %v3400_v6  ;;  %v2711_v20 = vpop.f32.mrb[79].mxu1 }
 0x384   : > { %v2751_v23 = vmax.f32 %v3428_v5, 0.0  ;;  %v3432_v24 = vadd.f32 %v4615_v19, %v2711_v20 }
 0x385   : > { %2770 = vst.msk [vmem:[%s4621_s12 + $0x70] sm:$0xff] %vm2755_vm8, %v2753_v26  ;;  %v2754_v25 = vmax.f32 %v3430_v16, 0.0 }
 0x386   : > { %2768 = vst.msk [vmem:[%s4621_s12 + $0x60] sm:$0xff] %vm2755_vm8, %v2751_v23  ;;  %v2752_v42 = vmax.f32 %v3432_v24, 0.0 }
 0x387   : > { %2771 = vst.msk [vmem:[%s4621_s12 + $0x78] sm:$0xff] %vm2755_vm8, %v2754_v25 }
 0x388   : > { %2769 = vst.msk [vmem:[%s4621_s12 + $0x68] sm:$0xff] %vm2755_vm8, %v2752_v42 }
 0x389   : > { %3565 = shalt.err (!%p3562_p13)
}
 0x38a   : > { %s3566_s23 = scalar_lea.hbm %s4667_s19, 2048  ;;  %s3570_s12 = scalar_lea.hbm %s4742_s11, 8192 }
 0x38b   : > { %p3567_p0 = scmp.ne.s32.totalorder %s4667_s19, %s3566_s23  ;;  %p3571_p4 = scmp.lt.u32.totalorder %s4667_s19, %s4742_s11 }
 0x38c   : > { %p3572_p5 = scmp.lt.u32.totalorder %s3570_s12, %s3566_s23  ;;  %p3574_p7 = scmp.lt.u32.totalorder %s3566_s23, %s4667_s19 }
 0x38d   : > { %p3568_p1 = pnand %p3567_p0, %p3762_p3 }
 0x38e   : > { %p3573_p6 = por %p3572_p5, %p3571_p4 }
 0x38f   : > { %p3569_p2 = pneg %p3568_p1 }
 0x390   : > { %p3575_p9 = por %p3574_p7, %p3573_p6 }
 0x392   : > { %p3576_p10 = pnand %p3575_p9, %p3569_p2 }
 0x394   : > { %3579 = shalt.err (!%p3576_p10)
}
 0x395   : > { %s3649_s3 = smov 128   ;;  %s3650_s20 = smov 8  }
 0x396   : > { %3461 = dma.vmem_to_hbm [thread:$0]  (%p3762_p3), %s4669_s21, 2048, %s4667_s19, %s4679_s22, %s3649_s3, %s3649_s3, %s3650_s20  }
 0x397 PF: > { %p3467_p11 = scmp.ge.s32.totalorder %s3646_s24, 2  ;;  %s2804_s26 = sand.u32 1, %s3618_s17  }
 0x398   : > { %s2805_s16 = scalar_lea.sflag [#allocation4], %s2804_s26 }
 0x399   : > { %p3464_p12 = pnand %p3467_p11, %p3771_p8 }
 0x39b   : > { %3613 = dma.done.wait (!%p3464_p12), %s2805_s16, 2048  }
 0x39c   : > { %3615 = vsyncadd (!%p3464_p12), %s2805_s16, 4294965248  ;;  %s24_s24 = sadd.s32 1, %s3646_s24   ;;  %s4767_s27 = sld [smem:[#allocation6_spill]] }
 0x39d   : > { %p21_p13 = scmp.ge.s32.totalorder %s24_s24, 6   ;;  %s4768_s19 = sld [smem:[#allocation12_spill]] }
 0x39e   : > { %s4769_s20 = sld [smem:[#allocation7_spill]]  ;;  %s4770_s21 = sld [smem:[#allocation8_spill]] }
 0x39f   : > { %s4771_s22 = sld [smem:[#allocation9_spill]]  ;;  %s4772_s23 = sld [smem:[#allocation10_spill]] }
 0x3a0   : > { %s4773_s17 = smov %s3622_s18  ;;  %23 = sbr.rel (!%p21_p13) target bundleno = 8 (0x8), region = 105 }
 0x3a2   : > { %s4774_s18 = smov %s4767_s27 }
 0x3a7   :  { %2810 = vsyncpa [#allocation4], 1 }
 0x3a8   :  { %2812 = vsyncpa [#allocation4 + $0x1], 1 }

</bundles_post_ra>
